<compile_context>
chip_gen: v7x
topology: tpu7x:2x2x1
jax: 0.10.0
libtpu: 0.0.40
codegen_flags: <defaults>
</compile_context>

<pallas_src>
import math

import jax
import jax.numpy as jnp
from jax import lax
from jax.experimental import pallas as pl
from jax.experimental.pallas import tpu as pltpu


# ---------------------------------------------------------------------------
# Glue: effective 3x3 SVLS filter (matches get_gaussian_kernel_2d +
# get_svls_filter_2d with the final /svls_kernel.sum() folded in).
# ---------------------------------------------------------------------------
def effective_svls_kernel(ksize, sigma):
    xs = jnp.arange(ksize, dtype=jnp.float32)
    x_grid = jnp.tile(xs, ksize).reshape(ksize, ksize)   # x_grid[i, j] = j
    y_grid = x_grid.T                                    # y_grid[i, j] = i
    mean = (ksize - 1) / 2.0
    variance = float(sigma) ** 2.0
    g = (1.0 / (2.0 * math.pi * variance + 1e-16)) * jnp.exp(
        -((x_grid - mean) ** 2.0 + (y_grid - mean) ** 2.0) / (2.0 * variance + 1e-16)
    )
    g = g / jnp.sum(g)
    # Reference hard-codes gkernel[1, 1] for the neighbor sum.
    neighbors_sum = 1.0 - g[1, 1] + 1e-16
    g = g.at[ksize // 2, ksize // 2].set(neighbors_sum)
    svls_kernel = g / neighbors_sum
    # Fold get_svls_filter_2d's "/ svls_kernel.sum()" into the weights.
    return (svls_kernel / jnp.sum(svls_kernel)).astype(jnp.float32)


# ---------------------------------------------------------------------------
# Pallas kernel (one (batch, row-tile) grid cell per invocation)
# ---------------------------------------------------------------------------
def _svls_ce_kernel(k_ref, lbl_hbm, x_ref, out_ref,
                    lmain_ref, ltop_ref, lbot_ref, dma_sem):
    """k_ref   : (3, 3) f32 in SMEM (effective SVLS filter)
       lbl_hbm : (N, H, W) int32 labels, raw HBM ref (memory_space=pl.ANY)
       x_ref   : (1, C, TH, W) logits tile (native dtype), VMEM
       out_ref : (1, 1, 8, 128) f32 partial-sum block, VMEM
       lmain/ltop/lbot : label scratch (TH, W) / (1, W) / (1, W) int32
       dma_sem : DMA semaphores (3,)
    """
    _, C, TH, W = x_ref.shape
    H = lbl_hbm.shape[1]

    n = pl.program_id(0)
    i = pl.program_id(1)
    r0 = i * TH
    top_row = jnp.maximum(r0 - 1, 0)          # replicate clamp (row r0-1)
    bot_row = jnp.minimum(r0 + TH, H - 1)     # replicate clamp (row r0+TH)

    # Manual DMA of the label block + its two halo rows (labels are ~1/C of the
    # logits traffic; the blocked logits tile rides the normal pipeline).
    cp_main = pltpu.make_async_copy(lbl_hbm.at[n, pl.ds(r0, TH), :], lmain_ref, dma_sem.at[0])
    cp_top = pltpu.make_async_copy(lbl_hbm.at[n, pl.ds(top_row, 1), :], ltop_ref, dma_sem.at[1])
    cp_bot = pltpu.make_async_copy(lbl_hbm.at[n, pl.ds(bot_row, 1), :], lbot_ref, dma_sem.at[2])
    cp_main.start()
    cp_top.start()
    cp_bot.start()

    def xc(c):  # one channel plane, upcast in-register (no wrapper-side cast)
        return x_ref[0, c].astype(jnp.float32)

    # log-sum-exp over channels while the label DMAs are in flight.
    # C sits on a non-minor axis -> plain VPU max/add, exp on the EUP.
    m = xc(0)
    for c in range(1, C):
        m = jnp.maximum(m, xc(c))
    s = jnp.exp(xc(0) - m)
    for c in range(1, C):
        s = s + jnp.exp(xc(c) - m)
    lse = jnp.log(s) + m                      # (TH, W)

    cp_main.wait()
    cp_top.wait()
    cp_bot.wait()

    main = lmain_ref[...]                     # (TH, W) int32
    top = ltop_ref[...]                       # (1, W)
    bot = lbot_ref[...]                       # (1, W)

    # Row-shifted label views with replicate clamping built in.
    row_vars = (
        jnp.concatenate([top, main[:-1, :]], axis=0),   # label at row r-1
        main,                                           # label at row r
        jnp.concatenate([main[1:, :], bot], axis=0),    # label at row r+1
    )

    def col_left(a):   # label at column max(w-1, 0)
        return jnp.concatenate([a[:, :1], a[:, :-1]], axis=1)

    def col_right(a):  # label at column min(w+1, W-1)
        return jnp.concatenate([a[:, 1:], a[:, -1:]], axis=1)

    # Fused one-hot / 3x3 SVLS conv / channel reduction:
    #   per-pixel loss = (sum_t k_t) * lse - sum_t k_t * x[lbl_shifted_t]
    pick = jnp.zeros((TH, W), jnp.float32)
    ksum = jnp.float32(0.0)
    for dy in range(3):
        base = row_vars[dy]
        col_vars = (col_left(base), base, col_right(base))
        for dx in range(3):
            kt = k_ref[dy, dx]
            ksum = ksum + kt
            lbl_t = col_vars[dx]
            p_t = jnp.where(lbl_t == 0, xc(0), 0.0)
            for c in range(1, C):
                p_t = p_t + jnp.where(lbl_t == c, xc(c), 0.0)
            pick = pick + kt * p_t

    per_px = ksum * lse - pick                # (TH, W)
    total = jnp.sum(per_px)                   # per-tile partial sum (f32)

    # Lane-dense (8,128) partial-sum block; scalar at [0,0], zeros elsewhere.
    ri = lax.broadcasted_iota(jnp.int32, (8, 128), 0)
    ci = lax.broadcasted_iota(jnp.int32, (8, 128), 1)
    blk = jnp.where((ri == 0) & (ci == 0), total, 0.0)
    out_ref[...] = blk[None, None, :, :]


# ---------------------------------------------------------------------------
# Tile-size helper: largest multiple-of-8 divisor of H whose logits tile fits
# the target VMEM budget (falls back to the full H when H % 8 != 0).
# ---------------------------------------------------------------------------
def _pick_tile_rows(H, bytes_per_row, target_bytes):
    if H % 8 != 0:
        # TODO(synk): masked remainder tiles for H not a multiple of 8.
        return H
    best = 8
    th = 8
    while th <= H:
        if H % th == 0 and th * bytes_per_row <= target_bytes:
            best = th
        th += 8
    return best


# ---------------------------------------------------------------------------
# Wrapper
# ---------------------------------------------------------------------------
def ce_loss_with_svls(outputs_nchw, labels, sigma, *, num_classes, ksize=3):
    """outputs_nchw: [N, C, H, W] float logits (native dtype, e.g. f32/bf16);
       labels: [N, H, W] int; sigma: scalar."""
    assert ksize == 3, "3x3 SVLS only"  # TODO(synk): ksize=5 halo not implemented
    N, C, H, W = outputs_nchw.shape
    assert C == num_classes

    eff_k = effective_svls_kernel(ksize, sigma)        # (3, 3) f32
    lbl = labels.astype(jnp.int32)                     # TODO(synk): int8 labels to cut HBM traffic on v5e
    x = outputs_nchw                                   # native layout & dtype — no transpose / cast

    itemsize = jnp.dtype(x.dtype).itemsize
    bytes_per_row = C * W * itemsize
    TH = _pick_tile_rows(H, bytes_per_row, target_bytes=6 << 20)
    num_tiles = H // TH
    grid = (N, num_tiles)

    tile_bytes = C * TH * W * itemsize
    # Double-buffered logits tile + label scratch + in-kernel temps, sized to
    # also fit v7x's 64 MiB VMEM.
    vmem_limit = int(min(max(4 * tile_bytes + (8 << 20), 32 << 20), 64 << 20))

    partials = pl.pallas_call(
        _svls_ce_kernel,
        out_shape=jax.ShapeDtypeStruct((N, num_tiles, 8, 128), jnp.float32),
        grid_spec=pltpu.PrefetchScalarGridSpec(
            num_scalar_prefetch=0,
            grid=grid,
            in_specs=[
                pl.BlockSpec(memory_space=pltpu.MemorySpace.SMEM),       # (3,3) filter
                pl.BlockSpec(memory_space=pl.ANY),                       # labels in HBM
                pl.BlockSpec((1, C, TH, W), lambda n, i: (n, 0, i, 0)),  # logits tile
            ],
            out_specs=pl.BlockSpec((1, 1, 8, 128), lambda n, i: (n, i, 0, 0)),
            scratch_shapes=[
                pltpu.VMEM((TH, W), jnp.int32),     # label rows of this tile
                pltpu.VMEM((1, W), jnp.int32),      # top halo row (clamped)
                pltpu.VMEM((1, W), jnp.int32),      # bottom halo row (clamped)
                pltpu.SemaphoreType.DMA((3,)),
            ],
        ),
        compiler_params=pltpu.CompilerParams(
            dimension_semantics=("parallel", "parallel"),
            vmem_limit_bytes=vmem_limit,
        ),
    )(eff_k, lbl, x)

    return jnp.sum(partials) / float(N * H * W)


# ---------------------------------------------------------------------------
# Pure-JAX reference (same math, no Pallas) for a correctness check.
# ---------------------------------------------------------------------------
def ref_ce_loss_with_svls(outputs_nchw, labels, sigma, *, num_classes, ksize=3):
    eff_k = effective_svls_kernel(ksize, sigma)
    N, C, H, W = outputs_nchw.shape
    oh = jax.nn.one_hot(labels, C, axis=1, dtype=jnp.float32)           # NCHW
    ohp = jnp.pad(oh, ((0, 0), (0, 0), (1, 1), (1, 1)), mode="edge")
    svls = jnp.zeros_like(oh)
    for dy in range(3):
        for dx in range(3):
            svls = svls + eff_k[dy, dx] * ohp[:, :, dy:dy + H, dx:dx + W]
    log_sm = jax.nn.log_softmax(outputs_nchw.astype(jnp.float32), axis=1)
    return jnp.mean(jnp.sum(-svls * log_sm, axis=1))


if __name__ == "__main__":
    key = jax.random.PRNGKey(0)
    k1, k2 = jax.random.split(key)

    N, C, H, W = 2, 4, 16, 16
    outputs = jax.random.normal(k1, (N, C, H, W), dtype=jnp.float32)
    labels = jax.random.randint(k2, (N, H, W), 0, C, dtype=jnp.int32)
    sigma = 1.0

    loss = ce_loss_with_svls(outputs, labels, sigma, num_classes=C, ksize=3)
    loss = jax.block_until_ready(loss)

    ref = ref_ce_loss_with_svls(outputs, labels, sigma, num_classes=C, ksize=3)
    assert abs(float(loss) - float(ref)) < 1e-3, (float(loss), float(ref))

    print("KERNEL_OK")
</pallas_src>

<mosaic_0001>
module attributes {stable_mosaic.version = 11 : i64} {
  func.func @_svls_ce_kernel(%arg0: i32, %arg1: i32, %arg2: memref<3x3xf32, #tpu.memory_space<smem>>, %arg3: memref<2x16x16xi32, #tpu.memory_space<any>>, %arg4: memref<1x4x16x16xf32, #tpu.memory_space<vmem>>, %arg5: memref<1x1x8x128xf32, #tpu.memory_space<vmem>>, %arg6: memref<16x16xi32, #tpu.memory_space<vmem>>, %arg7: memref<1x16xi32, #tpu.memory_space<vmem>>, %arg8: memref<1x16xi32, #tpu.memory_space<vmem>>, %arg9: memref<3x!tpu.dma_semaphore, #tpu.memory_space<semaphore_mem>>) attributes {dimension_semantics = [#tpu.dimension_semantics<parallel>, #tpu.dimension_semantics<parallel>], iteration_bounds = array<i64: 2, 1>, scalar_prefetch = 0 : i64, scratch_operands = 4 : i64, tpu.core_type = #tpu.core_type<tc>, window_params = [{transform_indices = @transform_0, window_bounds = array<i64: 3, 3>}, {}, {transform_indices = @transform_2, window_bounds = array<i64: 1, 4, 16, 16>}, {transform_indices = @transform_3, window_bounds = array<i64: 1, 1, 8, 128>}]} {
    %c16_i32 = arith.constant 16 : i32
    %0 = arith.muli %arg1, %c16_i32 : i32
    %c1_i32 = arith.constant 1 : i32
    %1 = arith.subi %0, %c1_i32 : i32
    %c0_i32 = arith.constant 0 : i32
    %2 = arith.maxsi %1, %c0_i32 : i32
    %c16_i32_0 = arith.constant 16 : i32
    %3 = arith.addi %0, %c16_i32_0 : i32
    %c15_i32 = arith.constant 15 : i32
    %4 = arith.minsi %3, %c15_i32 : i32
    %c0_i32_1 = arith.constant 0 : i32
    %c0_i32_2 = arith.constant 0 : i32
    %5 = tpu.memref_slice %arg3[%arg0, %0, %c0_i32_2] : memref<2x16x16xi32, #tpu.memory_space<any>> -> memref<1x16x16xi32, #tpu.memory_space<any>>
    %6 = tpu.memref_squeeze %5 : memref<1x16x16xi32, #tpu.memory_space<any>> -> memref<16x16xi32, #tpu.memory_space<any>>
    %7 = tpu.memref_slice %arg9[%c0_i32_1] : memref<3x!tpu.dma_semaphore, #tpu.memory_space<semaphore_mem>> -> memref<1x!tpu.dma_semaphore, #tpu.memory_space<semaphore_mem>>
    %8 = tpu.memref_squeeze %7 : memref<1x!tpu.dma_semaphore, #tpu.memory_space<semaphore_mem>> -> memref<!tpu.dma_semaphore, #tpu.memory_space<semaphore_mem>>
    tpu.enqueue_dma source(%6 : memref<16x16xi32, #tpu.memory_space<any>>) target(%arg6 : memref<16x16xi32, #tpu.memory_space<vmem>>) target_semaphore(%8 : memref<!tpu.dma_semaphore, #tpu.memory_space<semaphore_mem>>)
    %c1_i32_3 = arith.constant 1 : i32
    %c0_i32_4 = arith.constant 0 : i32
    %9 = tpu.memref_slice %arg3[%arg0, %2, %c0_i32_4] : memref<2x16x16xi32, #tpu.memory_space<any>> -> memref<1x1x16xi32, #tpu.memory_space<any>>
    %10 = tpu.memref_squeeze %9 : memref<1x1x16xi32, #tpu.memory_space<any>> -> memref<1x16xi32, #tpu.memory_space<any>>
    %11 = tpu.memref_slice %arg9[%c1_i32_3] : memref<3x!tpu.dma_semaphore, #tpu.memory_space<semaphore_mem>> -> memref<1x!tpu.dma_semaphore, #tpu.memory_space<semaphore_mem>>
    %12 = tpu.memref_squeeze %11 : memref<1x!tpu.dma_semaphore, #tpu.memory_space<semaphore_mem>> -> memref<!tpu.dma_semaphore, #tpu.memory_space<semaphore_mem>>
    tpu.enqueue_dma source(%10 : memref<1x16xi32, #tpu.memory_space<any>>) target(%arg7 : memref<1x16xi32, #tpu.memory_space<vmem>>) target_semaphore(%12 : memref<!tpu.dma_semaphore, #tpu.memory_space<semaphore_mem>>)
    %c2_i32 = arith.constant 2 : i32
    %c0_i32_5 = arith.constant 0 : i32
    %13 = tpu.memref_slice %arg3[%arg0, %4, %c0_i32_5] : memref<2x16x16xi32, #tpu.memory_space<any>> -> memref<1x1x16xi32, #tpu.memory_space<any>>
    %14 = tpu.memref_squeeze %13 : memref<1x1x16xi32, #tpu.memory_space<any>> -> memref<1x16xi32, #tpu.memory_space<any>>
    %15 = tpu.memref_slice %arg9[%c2_i32] : memref<3x!tpu.dma_semaphore, #tpu.memory_space<semaphore_mem>> -> memref<1x!tpu.dma_semaphore, #tpu.memory_space<semaphore_mem>>
    %16 = tpu.memref_squeeze %15 : memref<1x!tpu.dma_semaphore, #tpu.memory_space<semaphore_mem>> -> memref<!tpu.dma_semaphore, #tpu.memory_space<semaphore_mem>>
    tpu.enqueue_dma source(%14 : memref<1x16xi32, #tpu.memory_space<any>>) target(%arg8 : memref<1x16xi32, #tpu.memory_space<vmem>>) target_semaphore(%16 : memref<!tpu.dma_semaphore, #tpu.memory_space<semaphore_mem>>)
    %c0 = arith.constant 0 : index
    %c0_6 = arith.constant 0 : index
    %c0_7 = arith.constant 0 : index
    %c0_8 = arith.constant 0 : index
    %17 = vector.load %arg4[%c0, %c0_6, %c0_7, %c0_8] : memref<1x4x16x16xf32, #tpu.memory_space<vmem>>, vector<1x1x16x16xf32>
    %18 = vector.shape_cast %17 : vector<1x1x16x16xf32> to vector<16x16xf32>
    %c0_9 = arith.constant 0 : index
    %c1 = arith.constant 1 : index
    %c0_10 = arith.constant 0 : index
    %c0_11 = arith.constant 0 : index
    %19 = vector.load %arg4[%c0_9, %c1, %c0_10, %c0_11] : memref<1x4x16x16xf32, #tpu.memory_space<vmem>>, vector<1x1x16x16xf32>
    %20 = vector.shape_cast %19 : vector<1x1x16x16xf32> to vector<16x16xf32>
    %21 = arith.maximumf %18, %20 : vector<16x16xf32>
    %c0_12 = arith.constant 0 : index
    %c2 = arith.constant 2 : index
    %c0_13 = arith.constant 0 : index
    %c0_14 = arith.constant 0 : index
    %22 = vector.load %arg4[%c0_12, %c2, %c0_13, %c0_14] : memref<1x4x16x16xf32, #tpu.memory_space<vmem>>, vector<1x1x16x16xf32>
    %23 = vector.shape_cast %22 : vector<1x1x16x16xf32> to vector<16x16xf32>
    %24 = arith.maximumf %21, %23 : vector<16x16xf32>
    %c0_15 = arith.constant 0 : index
    %c3 = arith.constant 3 : index
    %c0_16 = arith.constant 0 : index
    %c0_17 = arith.constant 0 : index
    %25 = vector.load %arg4[%c0_15, %c3, %c0_16, %c0_17] : memref<1x4x16x16xf32, #tpu.memory_space<vmem>>, vector<1x1x16x16xf32>
    %26 = vector.shape_cast %25 : vector<1x1x16x16xf32> to vector<16x16xf32>
    %27 = arith.maximumf %24, %26 : vector<16x16xf32>
    %c0_18 = arith.constant 0 : index
    %c0_19 = arith.constant 0 : index
    %c0_20 = arith.constant 0 : index
    %c0_21 = arith.constant 0 : index
    %28 = vector.load %arg4[%c0_18, %c0_19, %c0_20, %c0_21] : memref<1x4x16x16xf32, #tpu.memory_space<vmem>>, vector<1x1x16x16xf32>
    %29 = vector.shape_cast %28 : vector<1x1x16x16xf32> to vector<16x16xf32>
    %30 = arith.subf %29, %27 : vector<16x16xf32>
    %31 = math.exp %30 : vector<16x16xf32>
    %c0_22 = arith.constant 0 : index
    %c1_23 = arith.constant 1 : index
    %c0_24 = arith.constant 0 : index
    %c0_25 = arith.constant 0 : index
    %32 = vector.load %arg4[%c0_22, %c1_23, %c0_24, %c0_25] : memref<1x4x16x16xf32, #tpu.memory_space<vmem>>, vector<1x1x16x16xf32>
    %33 = vector.shape_cast %32 : vector<1x1x16x16xf32> to vector<16x16xf32>
    %34 = arith.subf %33, %27 : vector<16x16xf32>
    %35 = math.exp %34 : vector<16x16xf32>
    %36 = arith.addf %31, %35 : vector<16x16xf32>
    %c0_26 = arith.constant 0 : index
    %c2_27 = arith.constant 2 : index
    %c0_28 = arith.constant 0 : index
    %c0_29 = arith.constant 0 : index
    %37 = vector.load %arg4[%c0_26, %c2_27, %c0_28, %c0_29] : memref<1x4x16x16xf32, #tpu.memory_space<vmem>>, vector<1x1x16x16xf32>
    %38 = vector.shape_cast %37 : vector<1x1x16x16xf32> to vector<16x16xf32>
    %39 = arith.subf %38, %27 : vector<16x16xf32>
    %40 = math.exp %39 : vector<16x16xf32>
    %41 = arith.addf %36, %40 : vector<16x16xf32>
    %c0_30 = arith.constant 0 : index
    %c3_31 = arith.constant 3 : index
    %c0_32 = arith.constant 0 : index
    %c0_33 = arith.constant 0 : index
    %42 = vector.load %arg4[%c0_30, %c3_31, %c0_32, %c0_33] : memref<1x4x16x16xf32, #tpu.memory_space<vmem>>, vector<1x1x16x16xf32>
    %43 = vector.shape_cast %42 : vector<1x1x16x16xf32> to vector<16x16xf32>
    %44 = arith.subf %43, %27 : vector<16x16xf32>
    %45 = math.exp %44 : vector<16x16xf32>
    %46 = arith.addf %41, %45 : vector<16x16xf32>
    %47 = math.log %46 : vector<16x16xf32>
    %48 = arith.addf %47, %27 : vector<16x16xf32>
    %c0_i32_34 = arith.constant 0 : i32
    %c0_i32_35 = arith.constant 0 : i32
    %49 = tpu.memref_slice %arg3[%arg0, %0, %c0_i32_35] : memref<2x16x16xi32, #tpu.memory_space<any>> -> memref<1x16x16xi32, #tpu.memory_space<any>>
    %50 = tpu.memref_squeeze %49 : memref<1x16x16xi32, #tpu.memory_space<any>> -> memref<16x16xi32, #tpu.memory_space<any>>
    %51 = tpu.memref_slice %arg9[%c0_i32_34] : memref<3x!tpu.dma_semaphore, #tpu.memory_space<semaphore_mem>> -> memref<1x!tpu.dma_semaphore, #tpu.memory_space<semaphore_mem>>
    %52 = tpu.memref_squeeze %51 : memref<1x!tpu.dma_semaphore, #tpu.memory_space<semaphore_mem>> -> memref<!tpu.dma_semaphore, #tpu.memory_space<semaphore_mem>>
    tpu.wait_dma2 semaphore(%52 : memref<!tpu.dma_semaphore, #tpu.memory_space<semaphore_mem>>) src(%50 : memref<16x16xi32, #tpu.memory_space<any>>) dst(%arg6 : memref<16x16xi32, #tpu.memory_space<vmem>>)
    %c1_i32_36 = arith.constant 1 : i32
    %c0_i32_37 = arith.constant 0 : i32
    %53 = tpu.memref_slice %arg3[%arg0, %2, %c0_i32_37] : memref<2x16x16xi32, #tpu.memory_space<any>> -> memref<1x1x16xi32, #tpu.memory_space<any>>
    %54 = tpu.memref_squeeze %53 : memref<1x1x16xi32, #tpu.memory_space<any>> -> memref<1x16xi32, #tpu.memory_space<any>>
    %55 = tpu.memref_slice %arg9[%c1_i32_36] : memref<3x!tpu.dma_semaphore, #tpu.memory_space<semaphore_mem>> -> memref<1x!tpu.dma_semaphore, #tpu.memory_space<semaphore_mem>>
    %56 = tpu.memref_squeeze %55 : memref<1x!tpu.dma_semaphore, #tpu.memory_space<semaphore_mem>> -> memref<!tpu.dma_semaphore, #tpu.memory_space<semaphore_mem>>
    tpu.wait_dma2 semaphore(%56 : memref<!tpu.dma_semaphore, #tpu.memory_space<semaphore_mem>>) src(%54 : memref<1x16xi32, #tpu.memory_space<any>>) dst(%arg7 : memref<1x16xi32, #tpu.memory_space<vmem>>)
    %c2_i32_38 = arith.constant 2 : i32
    %c0_i32_39 = arith.constant 0 : i32
    %57 = tpu.memref_slice %arg3[%arg0, %4, %c0_i32_39] : memref<2x16x16xi32, #tpu.memory_space<any>> -> memref<1x1x16xi32, #tpu.memory_space<any>>
    %58 = tpu.memref_squeeze %57 : memref<1x1x16xi32, #tpu.memory_space<any>> -> memref<1x16xi32, #tpu.memory_space<any>>
    %59 = tpu.memref_slice %arg9[%c2_i32_38] : memref<3x!tpu.dma_semaphore, #tpu.memory_space<semaphore_mem>> -> memref<1x!tpu.dma_semaphore, #tpu.memory_space<semaphore_mem>>
    %60 = tpu.memref_squeeze %59 : memref<1x!tpu.dma_semaphore, #tpu.memory_space<semaphore_mem>> -> memref<!tpu.dma_semaphore, #tpu.memory_space<semaphore_mem>>
    tpu.wait_dma2 semaphore(%60 : memref<!tpu.dma_semaphore, #tpu.memory_space<semaphore_mem>>) src(%58 : memref<1x16xi32, #tpu.memory_space<any>>) dst(%arg8 : memref<1x16xi32, #tpu.memory_space<vmem>>)
    %c0_40 = arith.constant 0 : index
    %c0_41 = arith.constant 0 : index
    %61 = vector.load %arg6[%c0_40, %c0_41] : memref<16x16xi32, #tpu.memory_space<vmem>>, vector<16x16xi32>
    %c0_42 = arith.constant 0 : index
    %c0_43 = arith.constant 0 : index
    %62 = vector.load %arg7[%c0_42, %c0_43] : memref<1x16xi32, #tpu.memory_space<vmem>>, vector<1x16xi32>
    %c0_44 = arith.constant 0 : index
    %c0_45 = arith.constant 0 : index
    %63 = vector.load %arg8[%c0_44, %c0_45] : memref<1x16xi32, #tpu.memory_space<vmem>>, vector<1x16xi32>
    %64 = vector.extract_strided_slice %61 {offsets = [0, 0], sizes = [15, 16], strides = [1, 1]} : vector<16x16xi32> to vector<15x16xi32>
    %65 = tpu.concatenate %62, %64 in 0 : vector<1x16xi32>, vector<15x16xi32> -> vector<16x16xi32>
    %66 = vector.extract_strided_slice %61 {offsets = [1, 0], sizes = [15, 16], strides = [1, 1]} : vector<16x16xi32> to vector<15x16xi32>
    %67 = tpu.concatenate %66, %63 in 0 : vector<15x16xi32>, vector<1x16xi32> -> vector<16x16xi32>
    %cst = arith.constant 0.000000e+00 : f32
    %68 = vector.broadcast %cst : f32 to vector<16x16xf32>
    %69 = vector.extract_strided_slice %65 {offsets = [0, 0], sizes = [16, 1], strides = [1, 1]} : vector<16x16xi32> to vector<16x1xi32>
    %70 = vector.extract_strided_slice %65 {offsets = [0, 0], sizes = [16, 15], strides = [1, 1]} : vector<16x16xi32> to vector<16x15xi32>
    %71 = tpu.concatenate %69, %70 in 1 : vector<16x1xi32>, vector<16x15xi32> -> vector<16x16xi32>
    %72 = vector.extract_strided_slice %65 {offsets = [0, 1], sizes = [16, 15], strides = [1, 1]} : vector<16x16xi32> to vector<16x15xi32>
    %73 = vector.extract_strided_slice %65 {offsets = [0, 15], sizes = [16, 1], strides = [1, 1]} : vector<16x16xi32> to vector<16x1xi32>
    %74 = tpu.concatenate %72, %73 in 1 : vector<16x15xi32>, vector<16x1xi32> -> vector<16x16xi32>
    %c0_46 = arith.constant 0 : index
    %c0_47 = arith.constant 0 : index
    %75 = memref.load %arg2[%c0_46, %c0_47] : memref<3x3xf32, #tpu.memory_space<smem>>
    %cst_48 = arith.constant 0.000000e+00 : f32
    %76 = arith.addf %cst_48, %75 : f32
    %c0_i32_49 = arith.constant 0 : i32
    %77 = vector.broadcast %c0_i32_49 : i32 to vector<16x16xi32>
    %78 = arith.cmpi eq, %71, %77 : vector<16x16xi32>
    %c0_50 = arith.constant 0 : index
    %c0_51 = arith.constant 0 : index
    %c0_52 = arith.constant 0 : index
    %c0_53 = arith.constant 0 : index
    %79 = vector.load %arg4[%c0_50, %c0_51, %c0_52, %c0_53] : memref<1x4x16x16xf32, #tpu.memory_space<vmem>>, vector<1x1x16x16xf32>
    %80 = vector.shape_cast %79 : vector<1x1x16x16xf32> to vector<16x16xf32>
    %cst_54 = arith.constant 0.000000e+00 : f32
    %81 = vector.broadcast %cst_54 : f32 to vector<16x16xf32>
    %82 = arith.select %78, %80, %81 : vector<16x16xi1>, vector<16x16xf32>
    %c1_i32_55 = arith.constant 1 : i32
    %83 = vector.broadcast %c1_i32_55 : i32 to vector<16x16xi32>
    %84 = arith.cmpi eq, %71, %83 : vector<16x16xi32>
    %c0_56 = arith.constant 0 : index
    %c1_57 = arith.constant 1 : index
    %c0_58 = arith.constant 0 : index
    %c0_59 = arith.constant 0 : index
    %85 = vector.load %arg4[%c0_56, %c1_57, %c0_58, %c0_59] : memref<1x4x16x16xf32, #tpu.memory_space<vmem>>, vector<1x1x16x16xf32>
    %86 = vector.shape_cast %85 : vector<1x1x16x16xf32> to vector<16x16xf32>
    %cst_60 = arith.constant 0.000000e+00 : f32
    %87 = vector.broadcast %cst_60 : f32 to vector<16x16xf32>
    %88 = arith.select %84, %86, %87 : vector<16x16xi1>, vector<16x16xf32>
    %89 = arith.addf %82, %88 : vector<16x16xf32>
    %c2_i32_61 = arith.constant 2 : i32
    %90 = vector.broadcast %c2_i32_61 : i32 to vector<16x16xi32>
    %91 = arith.cmpi eq, %71, %90 : vector<16x16xi32>
    %c0_62 = arith.constant 0 : index
    %c2_63 = arith.constant 2 : index
    %c0_64 = arith.constant 0 : index
    %c0_65 = arith.constant 0 : index
    %92 = vector.load %arg4[%c0_62, %c2_63, %c0_64, %c0_65] : memref<1x4x16x16xf32, #tpu.memory_space<vmem>>, vector<1x1x16x16xf32>
    %93 = vector.shape_cast %92 : vector<1x1x16x16xf32> to vector<16x16xf32>
    %cst_66 = arith.constant 0.000000e+00 : f32
    %94 = vector.broadcast %cst_66 : f32 to vector<16x16xf32>
    %95 = arith.select %91, %93, %94 : vector<16x16xi1>, vector<16x16xf32>
    %96 = arith.addf %89, %95 : vector<16x16xf32>
    %c3_i32 = arith.constant 3 : i32
    %97 = vector.broadcast %c3_i32 : i32 to vector<16x16xi32>
    %98 = arith.cmpi eq, %71, %97 : vector<16x16xi32>
    %c0_67 = arith.constant 0 : index
    %c3_68 = arith.constant 3 : index
    %c0_69 = arith.constant 0 : index
    %c0_70 = arith.constant 0 : index
    %99 = vector.load %arg4[%c0_67, %c3_68, %c0_69, %c0_70] : memref<1x4x16x16xf32, #tpu.memory_space<vmem>>, vector<1x1x16x16xf32>
    %100 = vector.shape_cast %99 : vector<1x1x16x16xf32> to vector<16x16xf32>
    %cst_71 = arith.constant 0.000000e+00 : f32
    %101 = vector.broadcast %cst_71 : f32 to vector<16x16xf32>
    %102 = arith.select %98, %100, %101 : vector<16x16xi1>, vector<16x16xf32>
    %103 = arith.addf %96, %102 : vector<16x16xf32>
    %104 = vector.broadcast %75 : f32 to vector<16x16xf32>
    %105 = arith.mulf %104, %103 : vector<16x16xf32>
    %106 = arith.addf %68, %105 : vector<16x16xf32>
    %c0_72 = arith.constant 0 : index
    %c1_73 = arith.constant 1 : index
    %107 = memref.load %arg2[%c0_72, %c1_73] : memref<3x3xf32, #tpu.memory_space<smem>>
    %108 = arith.addf %76, %107 : f32
    %c0_i32_74 = arith.constant 0 : i32
    %109 = vector.broadcast %c0_i32_74 : i32 to vector<16x16xi32>
    %110 = arith.cmpi eq, %65, %109 : vector<16x16xi32>
    %c0_75 = arith.constant 0 : index
    %c0_76 = arith.constant 0 : index
    %c0_77 = arith.constant 0 : index
    %c0_78 = arith.constant 0 : index
    %111 = vector.load %arg4[%c0_75, %c0_76, %c0_77, %c0_78] : memref<1x4x16x16xf32, #tpu.memory_space<vmem>>, vector<1x1x16x16xf32>
    %112 = vector.shape_cast %111 : vector<1x1x16x16xf32> to vector<16x16xf32>
    %cst_79 = arith.constant 0.000000e+00 : f32
    %113 = vector.broadcast %cst_79 : f32 to vector<16x16xf32>
    %114 = arith.select %110, %112, %113 : vector<16x16xi1>, vector<16x16xf32>
    %c1_i32_80 = arith.constant 1 : i32
    %115 = vector.broadcast %c1_i32_80 : i32 to vector<16x16xi32>
    %116 = arith.cmpi eq, %65, %115 : vector<16x16xi32>
    %c0_81 = arith.constant 0 : index
    %c1_82 = arith.constant 1 : index
    %c0_83 = arith.constant 0 : index
    %c0_84 = arith.constant 0 : index
    %117 = vector.load %arg4[%c0_81, %c1_82, %c0_83, %c0_84] : memref<1x4x16x16xf32, #tpu.memory_space<vmem>>, vector<1x1x16x16xf32>
    %118 = vector.shape_cast %117 : vector<1x1x16x16xf32> to vector<16x16xf32>
    %cst_85 = arith.constant 0.000000e+00 : f32
    %119 = vector.broadcast %cst_85 : f32 to vector<16x16xf32>
    %120 = arith.select %116, %118, %119 : vector<16x16xi1>, vector<16x16xf32>
    %121 = arith.addf %114, %120 : vector<16x16xf32>
    %c2_i32_86 = arith.constant 2 : i32
    %122 = vector.broadcast %c2_i32_86 : i32 to vector<16x16xi32>
    %123 = arith.cmpi eq, %65, %122 : vector<16x16xi32>
    %c0_87 = arith.constant 0 : index
    %c2_88 = arith.constant 2 : index
    %c0_89 = arith.constant 0 : index
    %c0_90 = arith.constant 0 : index
    %124 = vector.load %arg4[%c0_87, %c2_88, %c0_89, %c0_90] : memref<1x4x16x16xf32, #tpu.memory_space<vmem>>, vector<1x1x16x16xf32>
    %125 = vector.shape_cast %124 : vector<1x1x16x16xf32> to vector<16x16xf32>
    %cst_91 = arith.constant 0.000000e+00 : f32
    %126 = vector.broadcast %cst_91 : f32 to vector<16x16xf32>
    %127 = arith.select %123, %125, %126 : vector<16x16xi1>, vector<16x16xf32>
    %128 = arith.addf %121, %127 : vector<16x16xf32>
    %c3_i32_92 = arith.constant 3 : i32
    %129 = vector.broadcast %c3_i32_92 : i32 to vector<16x16xi32>
    %130 = arith.cmpi eq, %65, %129 : vector<16x16xi32>
    %c0_93 = arith.constant 0 : index
    %c3_94 = arith.constant 3 : index
    %c0_95 = arith.constant 0 : index
    %c0_96 = arith.constant 0 : index
    %131 = vector.load %arg4[%c0_93, %c3_94, %c0_95, %c0_96] : memref<1x4x16x16xf32, #tpu.memory_space<vmem>>, vector<1x1x16x16xf32>
    %132 = vector.shape_cast %131 : vector<1x1x16x16xf32> to vector<16x16xf32>
    %cst_97 = arith.constant 0.000000e+00 : f32
    %133 = vector.broadcast %cst_97 : f32 to vector<16x16xf32>
    %134 = arith.select %130, %132, %133 : vector<16x16xi1>, vector<16x16xf32>
    %135 = arith.addf %128, %134 : vector<16x16xf32>
    %136 = vector.broadcast %107 : f32 to vector<16x16xf32>
    %137 = arith.mulf %136, %135 : vector<16x16xf32>
    %138 = arith.addf %106, %137 : vector<16x16xf32>
    %c0_98 = arith.constant 0 : index
    %c2_99 = arith.constant 2 : index
    %139 = memref.load %arg2[%c0_98, %c2_99] : memref<3x3xf32, #tpu.memory_space<smem>>
    %140 = arith.addf %108, %139 : f32
    %c0_i32_100 = arith.constant 0 : i32
    %141 = vector.broadcast %c0_i32_100 : i32 to vector<16x16xi32>
    %142 = arith.cmpi eq, %74, %141 : vector<16x16xi32>
    %c0_101 = arith.constant 0 : index
    %c0_102 = arith.constant 0 : index
    %c0_103 = arith.constant 0 : index
    %c0_104 = arith.constant 0 : index
    %143 = vector.load %arg4[%c0_101, %c0_102, %c0_103, %c0_104] : memref<1x4x16x16xf32, #tpu.memory_space<vmem>>, vector<1x1x16x16xf32>
    %144 = vector.shape_cast %143 : vector<1x1x16x16xf32> to vector<16x16xf32>
    %cst_105 = arith.constant 0.000000e+00 : f32
    %145 = vector.broadcast %cst_105 : f32 to vector<16x16xf32>
    %146 = arith.select %142, %144, %145 : vector<16x16xi1>, vector<16x16xf32>
    %c1_i32_106 = arith.constant 1 : i32
    %147 = vector.broadcast %c1_i32_106 : i32 to vector<16x16xi32>
    %148 = arith.cmpi eq, %74, %147 : vector<16x16xi32>
    %c0_107 = arith.constant 0 : index
    %c1_108 = arith.constant 1 : index
    %c0_109 = arith.constant 0 : index
    %c0_110 = arith.constant 0 : index
    %149 = vector.load %arg4[%c0_107, %c1_108, %c0_109, %c0_110] : memref<1x4x16x16xf32, #tpu.memory_space<vmem>>, vector<1x1x16x16xf32>
    %150 = vector.shape_cast %149 : vector<1x1x16x16xf32> to vector<16x16xf32>
    %cst_111 = arith.constant 0.000000e+00 : f32
    %151 = vector.broadcast %cst_111 : f32 to vector<16x16xf32>
    %152 = arith.select %148, %150, %151 : vector<16x16xi1>, vector<16x16xf32>
    %153 = arith.addf %146, %152 : vector<16x16xf32>
    %c2_i32_112 = arith.constant 2 : i32
    %154 = vector.broadcast %c2_i32_112 : i32 to vector<16x16xi32>
    %155 = arith.cmpi eq, %74, %154 : vector<16x16xi32>
    %c0_113 = arith.constant 0 : index
    %c2_114 = arith.constant 2 : index
    %c0_115 = arith.constant 0 : index
    %c0_116 = arith.constant 0 : index
    %156 = vector.load %arg4[%c0_113, %c2_114, %c0_115, %c0_116] : memref<1x4x16x16xf32, #tpu.memory_space<vmem>>, vector<1x1x16x16xf32>
    %157 = vector.shape_cast %156 : vector<1x1x16x16xf32> to vector<16x16xf32>
    %cst_117 = arith.constant 0.000000e+00 : f32
    %158 = vector.broadcast %cst_117 : f32 to vector<16x16xf32>
    %159 = arith.select %155, %157, %158 : vector<16x16xi1>, vector<16x16xf32>
    %160 = arith.addf %153, %159 : vector<16x16xf32>
    %c3_i32_118 = arith.constant 3 : i32
    %161 = vector.broadcast %c3_i32_118 : i32 to vector<16x16xi32>
    %162 = arith.cmpi eq, %74, %161 : vector<16x16xi32>
    %c0_119 = arith.constant 0 : index
    %c3_120 = arith.constant 3 : index
    %c0_121 = arith.constant 0 : index
    %c0_122 = arith.constant 0 : index
    %163 = vector.load %arg4[%c0_119, %c3_120, %c0_121, %c0_122] : memref<1x4x16x16xf32, #tpu.memory_space<vmem>>, vector<1x1x16x16xf32>
    %164 = vector.shape_cast %163 : vector<1x1x16x16xf32> to vector<16x16xf32>
    %cst_123 = arith.constant 0.000000e+00 : f32
    %165 = vector.broadcast %cst_123 : f32 to vector<16x16xf32>
    %166 = arith.select %162, %164, %165 : vector<16x16xi1>, vector<16x16xf32>
    %167 = arith.addf %160, %166 : vector<16x16xf32>
    %168 = vector.broadcast %139 : f32 to vector<16x16xf32>
    %169 = arith.mulf %168, %167 : vector<16x16xf32>
    %170 = arith.addf %138, %169 : vector<16x16xf32>
    %171 = vector.extract_strided_slice %61 {offsets = [0, 0], sizes = [16, 1], strides = [1, 1]} : vector<16x16xi32> to vector<16x1xi32>
    %172 = vector.extract_strided_slice %61 {offsets = [0, 0], sizes = [16, 15], strides = [1, 1]} : vector<16x16xi32> to vector<16x15xi32>
    %173 = tpu.concatenate %171, %172 in 1 : vector<16x1xi32>, vector<16x15xi32> -> vector<16x16xi32>
    %174 = vector.extract_strided_slice %61 {offsets = [0, 1], sizes = [16, 15], strides = [1, 1]} : vector<16x16xi32> to vector<16x15xi32>
    %175 = vector.extract_strided_slice %61 {offsets = [0, 15], sizes = [16, 1], strides = [1, 1]} : vector<16x16xi32> to vector<16x1xi32>
    %176 = tpu.concatenate %174, %175 in 1 : vector<16x15xi32>, vector<16x1xi32> -> vector<16x16xi32>
    %c1_124 = arith.constant 1 : index
    %c0_125 = arith.constant 0 : index
    %177 = memref.load %arg2[%c1_124, %c0_125] : memref<3x3xf32, #tpu.memory_space<smem>>
    %178 = arith.addf %140, %177 : f32
    %c0_i32_126 = arith.constant 0 : i32
    %179 = vector.broadcast %c0_i32_126 : i32 to vector<16x16xi32>
    %180 = arith.cmpi eq, %173, %179 : vector<16x16xi32>
    %c0_127 = arith.constant 0 : index
    %c0_128 = arith.constant 0 : index
    %c0_129 = arith.constant 0 : index
    %c0_130 = arith.constant 0 : index
    %181 = vector.load %arg4[%c0_127, %c0_128, %c0_129, %c0_130] : memref<1x4x16x16xf32, #tpu.memory_space<vmem>>, vector<1x1x16x16xf32>
    %182 = vector.shape_cast %181 : vector<1x1x16x16xf32> to vector<16x16xf32>
    %cst_131 = arith.constant 0.000000e+00 : f32
    %183 = vector.broadcast %cst_131 : f32 to vector<16x16xf32>
    %184 = arith.select %180, %182, %183 : vector<16x16xi1>, vector<16x16xf32>
    %c1_i32_132 = arith.constant 1 : i32
    %185 = vector.broadcast %c1_i32_132 : i32 to vector<16x16xi32>
    %186 = arith.cmpi eq, %173, %185 : vector<16x16xi32>
    %c0_133 = arith.constant 0 : index
    %c1_134 = arith.constant 1 : index
    %c0_135 = arith.constant 0 : index
    %c0_136 = arith.constant 0 : index
    %187 = vector.load %arg4[%c0_133, %c1_134, %c0_135, %c0_136] : memref<1x4x16x16xf32, #tpu.memory_space<vmem>>, vector<1x1x16x16xf32>
    %188 = vector.shape_cast %187 : vector<1x1x16x16xf32> to vector<16x16xf32>
    %cst_137 = arith.constant 0.000000e+00 : f32
    %189 = vector.broadcast %cst_137 : f32 to vector<16x16xf32>
    %190 = arith.select %186, %188, %189 : vector<16x16xi1>, vector<16x16xf32>
    %191 = arith.addf %184, %190 : vector<16x16xf32>
    %c2_i32_138 = arith.constant 2 : i32
    %192 = vector.broadcast %c2_i32_138 : i32 to vector<16x16xi32>
    %193 = arith.cmpi eq, %173, %192 : vector<16x16xi32>
    %c0_139 = arith.constant 0 : index
    %c2_140 = arith.constant 2 : index
    %c0_141 = arith.constant 0 : index
    %c0_142 = arith.constant 0 : index
    %194 = vector.load %arg4[%c0_139, %c2_140, %c0_141, %c0_142] : memref<1x4x16x16xf32, #tpu.memory_space<vmem>>, vector<1x1x16x16xf32>
    %195 = vector.shape_cast %194 : vector<1x1x16x16xf32> to vector<16x16xf32>
    %cst_143 = arith.constant 0.000000e+00 : f32
    %196 = vector.broadcast %cst_143 : f32 to vector<16x16xf32>
    %197 = arith.select %193, %195, %196 : vector<16x16xi1>, vector<16x16xf32>
    %198 = arith.addf %191, %197 : vector<16x16xf32>
    %c3_i32_144 = arith.constant 3 : i32
    %199 = vector.broadcast %c3_i32_144 : i32 to vector<16x16xi32>
    %200 = arith.cmpi eq, %173, %199 : vector<16x16xi32>
    %c0_145 = arith.constant 0 : index
    %c3_146 = arith.constant 3 : index
    %c0_147 = arith.constant 0 : index
    %c0_148 = arith.constant 0 : index
    %201 = vector.load %arg4[%c0_145, %c3_146, %c0_147, %c0_148] : memref<1x4x16x16xf32, #tpu.memory_space<vmem>>, vector<1x1x16x16xf32>
    %202 = vector.shape_cast %201 : vector<1x1x16x16xf32> to vector<16x16xf32>
    %cst_149 = arith.constant 0.000000e+00 : f32
    %203 = vector.broadcast %cst_149 : f32 to vector<16x16xf32>
    %204 = arith.select %200, %202, %203 : vector<16x16xi1>, vector<16x16xf32>
    %205 = arith.addf %198, %204 : vector<16x16xf32>
    %206 = vector.broadcast %177 : f32 to vector<16x16xf32>
    %207 = arith.mulf %206, %205 : vector<16x16xf32>
    %208 = arith.addf %170, %207 : vector<16x16xf32>
    %c1_150 = arith.constant 1 : index
    %c1_151 = arith.constant 1 : index
    %209 = memref.load %arg2[%c1_150, %c1_151] : memref<3x3xf32, #tpu.memory_space<smem>>
    %210 = arith.addf %178, %209 : f32
    %c0_i32_152 = arith.constant 0 : i32
    %211 = vector.broadcast %c0_i32_152 : i32 to vector<16x16xi32>
    %212 = arith.cmpi eq, %61, %211 : vector<16x16xi32>
    %c0_153 = arith.constant 0 : index
    %c0_154 = arith.constant 0 : index
    %c0_155 = arith.constant 0 : index
    %c0_156 = arith.constant 0 : index
    %213 = vector.load %arg4[%c0_153, %c0_154, %c0_155, %c0_156] : memref<1x4x16x16xf32, #tpu.memory_space<vmem>>, vector<1x1x16x16xf32>
    %214 = vector.shape_cast %213 : vector<1x1x16x16xf32> to vector<16x16xf32>
    %cst_157 = arith.constant 0.000000e+00 : f32
    %215 = vector.broadcast %cst_157 : f32 to vector<16x16xf32>
    %216 = arith.select %212, %214, %215 : vector<16x16xi1>, vector<16x16xf32>
    %c1_i32_158 = arith.constant 1 : i32
    %217 = vector.broadcast %c1_i32_158 : i32 to vector<16x16xi32>
    %218 = arith.cmpi eq, %61, %217 : vector<16x16xi32>
    %c0_159 = arith.constant 0 : index
    %c1_160 = arith.constant 1 : index
    %c0_161 = arith.constant 0 : index
    %c0_162 = arith.constant 0 : index
    %219 = vector.load %arg4[%c0_159, %c1_160, %c0_161, %c0_162] : memref<1x4x16x16xf32, #tpu.memory_space<vmem>>, vector<1x1x16x16xf32>
    %220 = vector.shape_cast %219 : vector<1x1x16x16xf32> to vector<16x16xf32>
    %cst_163 = arith.constant 0.000000e+00 : f32
    %221 = vector.broadcast %cst_163 : f32 to vector<16x16xf32>
    %222 = arith.select %218, %220, %221 : vector<16x16xi1>, vector<16x16xf32>
    %223 = arith.addf %216, %222 : vector<16x16xf32>
    %c2_i32_164 = arith.constant 2 : i32
    %224 = vector.broadcast %c2_i32_164 : i32 to vector<16x16xi32>
    %225 = arith.cmpi eq, %61, %224 : vector<16x16xi32>
    %c0_165 = arith.constant 0 : index
    %c2_166 = arith.constant 2 : index
    %c0_167 = arith.constant 0 : index
    %c0_168 = arith.constant 0 : index
    %226 = vector.load %arg4[%c0_165, %c2_166, %c0_167, %c0_168] : memref<1x4x16x16xf32, #tpu.memory_space<vmem>>, vector<1x1x16x16xf32>
    %227 = vector.shape_cast %226 : vector<1x1x16x16xf32> to vector<16x16xf32>
    %cst_169 = arith.constant 0.000000e+00 : f32
    %228 = vector.broadcast %cst_169 : f32 to vector<16x16xf32>
    %229 = arith.select %225, %227, %228 : vector<16x16xi1>, vector<16x16xf32>
    %230 = arith.addf %223, %229 : vector<16x16xf32>
    %c3_i32_170 = arith.constant 3 : i32
    %231 = vector.broadcast %c3_i32_170 : i32 to vector<16x16xi32>
    %232 = arith.cmpi eq, %61, %231 : vector<16x16xi32>
    %c0_171 = arith.constant 0 : index
    %c3_172 = arith.constant 3 : index
    %c0_173 = arith.constant 0 : index
    %c0_174 = arith.constant 0 : index
    %233 = vector.load %arg4[%c0_171, %c3_172, %c0_173, %c0_174] : memref<1x4x16x16xf32, #tpu.memory_space<vmem>>, vector<1x1x16x16xf32>
    %234 = vector.shape_cast %233 : vector<1x1x16x16xf32> to vector<16x16xf32>
    %cst_175 = arith.constant 0.000000e+00 : f32
    %235 = vector.broadcast %cst_175 : f32 to vector<16x16xf32>
    %236 = arith.select %232, %234, %235 : vector<16x16xi1>, vector<16x16xf32>
    %237 = arith.addf %230, %236 : vector<16x16xf32>
    %238 = vector.broadcast %209 : f32 to vector<16x16xf32>
    %239 = arith.mulf %238, %237 : vector<16x16xf32>
    %240 = arith.addf %208, %239 : vector<16x16xf32>
    %c1_176 = arith.constant 1 : index
    %c2_177 = arith.constant 2 : index
    %241 = memref.load %arg2[%c1_176, %c2_177] : memref<3x3xf32, #tpu.memory_space<smem>>
    %242 = arith.addf %210, %241 : f32
    %c0_i32_178 = arith.constant 0 : i32
    %243 = vector.broadcast %c0_i32_178 : i32 to vector<16x16xi32>
    %244 = arith.cmpi eq, %176, %243 : vector<16x16xi32>
    %c0_179 = arith.constant 0 : index
    %c0_180 = arith.constant 0 : index
    %c0_181 = arith.constant 0 : index
    %c0_182 = arith.constant 0 : index
    %245 = vector.load %arg4[%c0_179, %c0_180, %c0_181, %c0_182] : memref<1x4x16x16xf32, #tpu.memory_space<vmem>>, vector<1x1x16x16xf32>
    %246 = vector.shape_cast %245 : vector<1x1x16x16xf32> to vector<16x16xf32>
    %cst_183 = arith.constant 0.000000e+00 : f32
    %247 = vector.broadcast %cst_183 : f32 to vector<16x16xf32>
    %248 = arith.select %244, %246, %247 : vector<16x16xi1>, vector<16x16xf32>
    %c1_i32_184 = arith.constant 1 : i32
    %249 = vector.broadcast %c1_i32_184 : i32 to vector<16x16xi32>
    %250 = arith.cmpi eq, %176, %249 : vector<16x16xi32>
    %c0_185 = arith.constant 0 : index
    %c1_186 = arith.constant 1 : index
    %c0_187 = arith.constant 0 : index
    %c0_188 = arith.constant 0 : index
    %251 = vector.load %arg4[%c0_185, %c1_186, %c0_187, %c0_188] : memref<1x4x16x16xf32, #tpu.memory_space<vmem>>, vector<1x1x16x16xf32>
    %252 = vector.shape_cast %251 : vector<1x1x16x16xf32> to vector<16x16xf32>
    %cst_189 = arith.constant 0.000000e+00 : f32
    %253 = vector.broadcast %cst_189 : f32 to vector<16x16xf32>
    %254 = arith.select %250, %252, %253 : vector<16x16xi1>, vector<16x16xf32>
    %255 = arith.addf %248, %254 : vector<16x16xf32>
    %c2_i32_190 = arith.constant 2 : i32
    %256 = vector.broadcast %c2_i32_190 : i32 to vector<16x16xi32>
    %257 = arith.cmpi eq, %176, %256 : vector<16x16xi32>
    %c0_191 = arith.constant 0 : index
    %c2_192 = arith.constant 2 : index
    %c0_193 = arith.constant 0 : index
    %c0_194 = arith.constant 0 : index
    %258 = vector.load %arg4[%c0_191, %c2_192, %c0_193, %c0_194] : memref<1x4x16x16xf32, #tpu.memory_space<vmem>>, vector<1x1x16x16xf32>
    %259 = vector.shape_cast %258 : vector<1x1x16x16xf32> to vector<16x16xf32>
    %cst_195 = arith.constant 0.000000e+00 : f32
    %260 = vector.broadcast %cst_195 : f32 to vector<16x16xf32>
    %261 = arith.select %257, %259, %260 : vector<16x16xi1>, vector<16x16xf32>
    %262 = arith.addf %255, %261 : vector<16x16xf32>
    %c3_i32_196 = arith.constant 3 : i32
    %263 = vector.broadcast %c3_i32_196 : i32 to vector<16x16xi32>
    %264 = arith.cmpi eq, %176, %263 : vector<16x16xi32>
    %c0_197 = arith.constant 0 : index
    %c3_198 = arith.constant 3 : index
    %c0_199 = arith.constant 0 : index
    %c0_200 = arith.constant 0 : index
    %265 = vector.load %arg4[%c0_197, %c3_198, %c0_199, %c0_200] : memref<1x4x16x16xf32, #tpu.memory_space<vmem>>, vector<1x1x16x16xf32>
    %266 = vector.shape_cast %265 : vector<1x1x16x16xf32> to vector<16x16xf32>
    %cst_201 = arith.constant 0.000000e+00 : f32
    %267 = vector.broadcast %cst_201 : f32 to vector<16x16xf32>
    %268 = arith.select %264, %266, %267 : vector<16x16xi1>, vector<16x16xf32>
    %269 = arith.addf %262, %268 : vector<16x16xf32>
    %270 = vector.broadcast %241 : f32 to vector<16x16xf32>
    %271 = arith.mulf %270, %269 : vector<16x16xf32>
    %272 = arith.addf %240, %271 : vector<16x16xf32>
    %273 = vector.extract_strided_slice %67 {offsets = [0, 0], sizes = [16, 1], strides = [1, 1]} : vector<16x16xi32> to vector<16x1xi32>
    %274 = vector.extract_strided_slice %67 {offsets = [0, 0], sizes = [16, 15], strides = [1, 1]} : vector<16x16xi32> to vector<16x15xi32>
    %275 = tpu.concatenate %273, %274 in 1 : vector<16x1xi32>, vector<16x15xi32> -> vector<16x16xi32>
    %276 = vector.extract_strided_slice %67 {offsets = [0, 1], sizes = [16, 15], strides = [1, 1]} : vector<16x16xi32> to vector<16x15xi32>
    %277 = vector.extract_strided_slice %67 {offsets = [0, 15], sizes = [16, 1], strides = [1, 1]} : vector<16x16xi32> to vector<16x1xi32>
    %278 = tpu.concatenate %276, %277 in 1 : vector<16x15xi32>, vector<16x1xi32> -> vector<16x16xi32>
    %c2_202 = arith.constant 2 : index
    %c0_203 = arith.constant 0 : index
    %279 = memref.load %arg2[%c2_202, %c0_203] : memref<3x3xf32, #tpu.memory_space<smem>>
    %280 = arith.addf %242, %279 : f32
    %c0_i32_204 = arith.constant 0 : i32
    %281 = vector.broadcast %c0_i32_204 : i32 to vector<16x16xi32>
    %282 = arith.cmpi eq, %275, %281 : vector<16x16xi32>
    %c0_205 = arith.constant 0 : index
    %c0_206 = arith.constant 0 : index
    %c0_207 = arith.constant 0 : index
    %c0_208 = arith.constant 0 : index
    %283 = vector.load %arg4[%c0_205, %c0_206, %c0_207, %c0_208] : memref<1x4x16x16xf32, #tpu.memory_space<vmem>>, vector<1x1x16x16xf32>
    %284 = vector.shape_cast %283 : vector<1x1x16x16xf32> to vector<16x16xf32>
    %cst_209 = arith.constant 0.000000e+00 : f32
    %285 = vector.broadcast %cst_209 : f32 to vector<16x16xf32>
    %286 = arith.select %282, %284, %285 : vector<16x16xi1>, vector<16x16xf32>
    %c1_i32_210 = arith.constant 1 : i32
    %287 = vector.broadcast %c1_i32_210 : i32 to vector<16x16xi32>
    %288 = arith.cmpi eq, %275, %287 : vector<16x16xi32>
    %c0_211 = arith.constant 0 : index
    %c1_212 = arith.constant 1 : index
    %c0_213 = arith.constant 0 : index
    %c0_214 = arith.constant 0 : index
    %289 = vector.load %arg4[%c0_211, %c1_212, %c0_213, %c0_214] : memref<1x4x16x16xf32, #tpu.memory_space<vmem>>, vector<1x1x16x16xf32>
    %290 = vector.shape_cast %289 : vector<1x1x16x16xf32> to vector<16x16xf32>
    %cst_215 = arith.constant 0.000000e+00 : f32
    %291 = vector.broadcast %cst_215 : f32 to vector<16x16xf32>
    %292 = arith.select %288, %290, %291 : vector<16x16xi1>, vector<16x16xf32>
    %293 = arith.addf %286, %292 : vector<16x16xf32>
    %c2_i32_216 = arith.constant 2 : i32
    %294 = vector.broadcast %c2_i32_216 : i32 to vector<16x16xi32>
    %295 = arith.cmpi eq, %275, %294 : vector<16x16xi32>
    %c0_217 = arith.constant 0 : index
    %c2_218 = arith.constant 2 : index
    %c0_219 = arith.constant 0 : index
    %c0_220 = arith.constant 0 : index
    %296 = vector.load %arg4[%c0_217, %c2_218, %c0_219, %c0_220] : memref<1x4x16x16xf32, #tpu.memory_space<vmem>>, vector<1x1x16x16xf32>
    %297 = vector.shape_cast %296 : vector<1x1x16x16xf32> to vector<16x16xf32>
    %cst_221 = arith.constant 0.000000e+00 : f32
    %298 = vector.broadcast %cst_221 : f32 to vector<16x16xf32>
    %299 = arith.select %295, %297, %298 : vector<16x16xi1>, vector<16x16xf32>
    %300 = arith.addf %293, %299 : vector<16x16xf32>
    %c3_i32_222 = arith.constant 3 : i32
    %301 = vector.broadcast %c3_i32_222 : i32 to vector<16x16xi32>
    %302 = arith.cmpi eq, %275, %301 : vector<16x16xi32>
    %c0_223 = arith.constant 0 : index
    %c3_224 = arith.constant 3 : index
    %c0_225 = arith.constant 0 : index
    %c0_226 = arith.constant 0 : index
    %303 = vector.load %arg4[%c0_223, %c3_224, %c0_225, %c0_226] : memref<1x4x16x16xf32, #tpu.memory_space<vmem>>, vector<1x1x16x16xf32>
    %304 = vector.shape_cast %303 : vector<1x1x16x16xf32> to vector<16x16xf32>
    %cst_227 = arith.constant 0.000000e+00 : f32
    %305 = vector.broadcast %cst_227 : f32 to vector<16x16xf32>
    %306 = arith.select %302, %304, %305 : vector<16x16xi1>, vector<16x16xf32>
    %307 = arith.addf %300, %306 : vector<16x16xf32>
    %308 = vector.broadcast %279 : f32 to vector<16x16xf32>
    %309 = arith.mulf %308, %307 : vector<16x16xf32>
    %310 = arith.addf %272, %309 : vector<16x16xf32>
    %c2_228 = arith.constant 2 : index
    %c1_229 = arith.constant 1 : index
    %311 = memref.load %arg2[%c2_228, %c1_229] : memref<3x3xf32, #tpu.memory_space<smem>>
    %312 = arith.addf %280, %311 : f32
    %c0_i32_230 = arith.constant 0 : i32
    %313 = vector.broadcast %c0_i32_230 : i32 to vector<16x16xi32>
    %314 = arith.cmpi eq, %67, %313 : vector<16x16xi32>
    %c0_231 = arith.constant 0 : index
    %c0_232 = arith.constant 0 : index
    %c0_233 = arith.constant 0 : index
    %c0_234 = arith.constant 0 : index
    %315 = vector.load %arg4[%c0_231, %c0_232, %c0_233, %c0_234] : memref<1x4x16x16xf32, #tpu.memory_space<vmem>>, vector<1x1x16x16xf32>
    %316 = vector.shape_cast %315 : vector<1x1x16x16xf32> to vector<16x16xf32>
    %cst_235 = arith.constant 0.000000e+00 : f32
    %317 = vector.broadcast %cst_235 : f32 to vector<16x16xf32>
    %318 = arith.select %314, %316, %317 : vector<16x16xi1>, vector<16x16xf32>
    %c1_i32_236 = arith.constant 1 : i32
    %319 = vector.broadcast %c1_i32_236 : i32 to vector<16x16xi32>
    %320 = arith.cmpi eq, %67, %319 : vector<16x16xi32>
    %c0_237 = arith.constant 0 : index
    %c1_238 = arith.constant 1 : index
    %c0_239 = arith.constant 0 : index
    %c0_240 = arith.constant 0 : index
    %321 = vector.load %arg4[%c0_237, %c1_238, %c0_239, %c0_240] : memref<1x4x16x16xf32, #tpu.memory_space<vmem>>, vector<1x1x16x16xf32>
    %322 = vector.shape_cast %321 : vector<1x1x16x16xf32> to vector<16x16xf32>
    %cst_241 = arith.constant 0.000000e+00 : f32
    %323 = vector.broadcast %cst_241 : f32 to vector<16x16xf32>
    %324 = arith.select %320, %322, %323 : vector<16x16xi1>, vector<16x16xf32>
    %325 = arith.addf %318, %324 : vector<16x16xf32>
    %c2_i32_242 = arith.constant 2 : i32
    %326 = vector.broadcast %c2_i32_242 : i32 to vector<16x16xi32>
    %327 = arith.cmpi eq, %67, %326 : vector<16x16xi32>
    %c0_243 = arith.constant 0 : index
    %c2_244 = arith.constant 2 : index
    %c0_245 = arith.constant 0 : index
    %c0_246 = arith.constant 0 : index
    %328 = vector.load %arg4[%c0_243, %c2_244, %c0_245, %c0_246] : memref<1x4x16x16xf32, #tpu.memory_space<vmem>>, vector<1x1x16x16xf32>
    %329 = vector.shape_cast %328 : vector<1x1x16x16xf32> to vector<16x16xf32>
    %cst_247 = arith.constant 0.000000e+00 : f32
    %330 = vector.broadcast %cst_247 : f32 to vector<16x16xf32>
    %331 = arith.select %327, %329, %330 : vector<16x16xi1>, vector<16x16xf32>
    %332 = arith.addf %325, %331 : vector<16x16xf32>
    %c3_i32_248 = arith.constant 3 : i32
    %333 = vector.broadcast %c3_i32_248 : i32 to vector<16x16xi32>
    %334 = arith.cmpi eq, %67, %333 : vector<16x16xi32>
    %c0_249 = arith.constant 0 : index
    %c3_250 = arith.constant 3 : index
    %c0_251 = arith.constant 0 : index
    %c0_252 = arith.constant 0 : index
    %335 = vector.load %arg4[%c0_249, %c3_250, %c0_251, %c0_252] : memref<1x4x16x16xf32, #tpu.memory_space<vmem>>, vector<1x1x16x16xf32>
    %336 = vector.shape_cast %335 : vector<1x1x16x16xf32> to vector<16x16xf32>
    %cst_253 = arith.constant 0.000000e+00 : f32
    %337 = vector.broadcast %cst_253 : f32 to vector<16x16xf32>
    %338 = arith.select %334, %336, %337 : vector<16x16xi1>, vector<16x16xf32>
    %339 = arith.addf %332, %338 : vector<16x16xf32>
    %340 = vector.broadcast %311 : f32 to vector<16x16xf32>
    %341 = arith.mulf %340, %339 : vector<16x16xf32>
    %342 = arith.addf %310, %341 : vector<16x16xf32>
    %c2_254 = arith.constant 2 : index
    %c2_255 = arith.constant 2 : index
    %343 = memref.load %arg2[%c2_254, %c2_255] : memref<3x3xf32, #tpu.memory_space<smem>>
    %344 = arith.addf %312, %343 : f32
    %c0_i32_256 = arith.constant 0 : i32
    %345 = vector.broadcast %c0_i32_256 : i32 to vector<16x16xi32>
    %346 = arith.cmpi eq, %278, %345 : vector<16x16xi32>
    %c0_257 = arith.constant 0 : index
    %c0_258 = arith.constant 0 : index
    %c0_259 = arith.constant 0 : index
    %c0_260 = arith.constant 0 : index
    %347 = vector.load %arg4[%c0_257, %c0_258, %c0_259, %c0_260] : memref<1x4x16x16xf32, #tpu.memory_space<vmem>>, vector<1x1x16x16xf32>
    %348 = vector.shape_cast %347 : vector<1x1x16x16xf32> to vector<16x16xf32>
    %cst_261 = arith.constant 0.000000e+00 : f32
    %349 = vector.broadcast %cst_261 : f32 to vector<16x16xf32>
    %350 = arith.select %346, %348, %349 : vector<16x16xi1>, vector<16x16xf32>
    %c1_i32_262 = arith.constant 1 : i32
    %351 = vector.broadcast %c1_i32_262 : i32 to vector<16x16xi32>
    %352 = arith.cmpi eq, %278, %351 : vector<16x16xi32>
    %c0_263 = arith.constant 0 : index
    %c1_264 = arith.constant 1 : index
    %c0_265 = arith.constant 0 : index
    %c0_266 = arith.constant 0 : index
    %353 = vector.load %arg4[%c0_263, %c1_264, %c0_265, %c0_266] : memref<1x4x16x16xf32, #tpu.memory_space<vmem>>, vector<1x1x16x16xf32>
    %354 = vector.shape_cast %353 : vector<1x1x16x16xf32> to vector<16x16xf32>
    %cst_267 = arith.constant 0.000000e+00 : f32
    %355 = vector.broadcast %cst_267 : f32 to vector<16x16xf32>
    %356 = arith.select %352, %354, %355 : vector<16x16xi1>, vector<16x16xf32>
    %357 = arith.addf %350, %356 : vector<16x16xf32>
    %c2_i32_268 = arith.constant 2 : i32
    %358 = vector.broadcast %c2_i32_268 : i32 to vector<16x16xi32>
    %359 = arith.cmpi eq, %278, %358 : vector<16x16xi32>
    %c0_269 = arith.constant 0 : index
    %c2_270 = arith.constant 2 : index
    %c0_271 = arith.constant 0 : index
    %c0_272 = arith.constant 0 : index
    %360 = vector.load %arg4[%c0_269, %c2_270, %c0_271, %c0_272] : memref<1x4x16x16xf32, #tpu.memory_space<vmem>>, vector<1x1x16x16xf32>
    %361 = vector.shape_cast %360 : vector<1x1x16x16xf32> to vector<16x16xf32>
    %cst_273 = arith.constant 0.000000e+00 : f32
    %362 = vector.broadcast %cst_273 : f32 to vector<16x16xf32>
    %363 = arith.select %359, %361, %362 : vector<16x16xi1>, vector<16x16xf32>
    %364 = arith.addf %357, %363 : vector<16x16xf32>
    %c3_i32_274 = arith.constant 3 : i32
    %365 = vector.broadcast %c3_i32_274 : i32 to vector<16x16xi32>
    %366 = arith.cmpi eq, %278, %365 : vector<16x16xi32>
    %c0_275 = arith.constant 0 : index
    %c3_276 = arith.constant 3 : index
    %c0_277 = arith.constant 0 : index
    %c0_278 = arith.constant 0 : index
    %367 = vector.load %arg4[%c0_275, %c3_276, %c0_277, %c0_278] : memref<1x4x16x16xf32, #tpu.memory_space<vmem>>, vector<1x1x16x16xf32>
    %368 = vector.shape_cast %367 : vector<1x1x16x16xf32> to vector<16x16xf32>
    %cst_279 = arith.constant 0.000000e+00 : f32
    %369 = vector.broadcast %cst_279 : f32 to vector<16x16xf32>
    %370 = arith.select %366, %368, %369 : vector<16x16xi1>, vector<16x16xf32>
    %371 = arith.addf %364, %370 : vector<16x16xf32>
    %372 = vector.broadcast %343 : f32 to vector<16x16xf32>
    %373 = arith.mulf %372, %371 : vector<16x16xf32>
    %374 = arith.addf %342, %373 : vector<16x16xf32>
    %375 = vector.broadcast %344 : f32 to vector<16x16xf32>
    %376 = arith.mulf %375, %48 : vector<16x16xf32>
    %377 = arith.subf %376, %374 : vector<16x16xf32>
    %378 = vector.shape_cast %377 : vector<16x16xf32> to vector<1x16x16xf32>
    %cst_280 = arith.constant dense<0.000000e+00> : vector<1xf32>
    %379 = vector.multi_reduction <add>, %378, %cst_280 [1, 2] : vector<1x16x16xf32> to vector<1xf32>
    %380 = vector.shape_cast %379 : vector<1xf32> to vector<1x1x1xf32>
    %381 = vector.extract %380[0, 0, 0] : f32 from vector<1x1x1xf32>
    %382 = tpu.iota {dimensions = array<i32: 0>} : vector<8x128xi32>
    %383 = tpu.iota {dimensions = array<i32: 1>} : vector<8x128xi32>
    %c0_i32_281 = arith.constant 0 : i32
    %384 = vector.broadcast %c0_i32_281 : i32 to vector<8x128xi32>
    %385 = arith.cmpi eq, %382, %384 : vector<8x128xi32>
    %c0_i32_282 = arith.constant 0 : i32
    %386 = vector.broadcast %c0_i32_282 : i32 to vector<8x128xi32>
    %387 = arith.cmpi eq, %383, %386 : vector<8x128xi32>
    %388 = arith.andi %385, %387 : vector<8x128xi1>
    %cst_283 = arith.constant 0.000000e+00 : f32
    %389 = vector.broadcast %381 : f32 to vector<8x128xf32>
    %390 = vector.broadcast %cst_283 : f32 to vector<8x128xf32>
    %391 = arith.select %388, %389, %390 : vector<8x128xi1>, vector<8x128xf32>
    %392 = vector.shape_cast %391 : vector<8x128xf32> to vector<1x1x8x128xf32>
    %c0_284 = arith.constant 0 : index
    %c0_285 = arith.constant 0 : index
    %c0_286 = arith.constant 0 : index
    %c0_287 = arith.constant 0 : index
    %393 = vector.load %arg5[%c0_284, %c0_285, %c0_286, %c0_287] : memref<1x1x8x128xf32, #tpu.memory_space<vmem>>, vector<1x1x8x128xf32>
    tpu.vector_store %arg5[%c0_284, %c0_285, %c0_286, %c0_287], %392 {strides = array<i32>} : memref<1x1x8x128xf32, #tpu.memory_space<vmem>>, vector<1x1x8x128xf32>,
    return
  }
  func.func @transform_0(%arg0: i32, %arg1: i32) -> (i32, i32) {
    %c0_i32 = arith.constant 0 : i32
    %c0_i32_0 = arith.constant 0 : i32
    %c0_i32_1 = arith.constant 0 : i32
    return %c0_i32, %c0_i32_0 : i32, i32
  }
  func.func @transform_2(%arg0: i32, %arg1: i32) -> (i32, i32, i32, i32) {
    %c0_i32 = arith.constant 0 : i32
    %c0_i32_0 = arith.constant 0 : i32
    %c0_i32_1 = arith.constant 0 : i32
    return %arg0, %c0_i32, %arg1, %c0_i32_0 : i32, i32, i32, i32
  }
  func.func @transform_3(%arg0: i32, %arg1: i32) -> (i32, i32, i32, i32) {
    %c0_i32 = arith.constant 0 : i32
    %c0_i32_0 = arith.constant 0 : i32
    %c0_i32_1 = arith.constant 0 : i32
    return %arg0, %arg1, %c0_i32, %c0_i32_0 : i32, i32, i32, i32
  }
}

</mosaic_0001>

<bundles_post_ra>
// kernel: tpu_custom_call.1
= control target key start
LH: loop header
LB: loop body
LE: loop exit
PB: predicated region body
PF: predicated region fallthrough
CT: control target
= control target key end

     0   :  { %8 = vsyncpa [#allocation9], 0  ;;  %s1798_s0 = inlined_call_operand.hbm [shape: f32[3,3], index: 0, kind: input, shape index: {}]   ;;  %s1799_s1 = inlined_call_operand.hbm [shape: s32[2,16,16], index: 1, kind: input, shape index: {}]   ;;  %s1800_s2 = inlined_call_operand.hbm [shape: f32[2,4,16,16], index: 2, kind: input, shape index: {}]   ;;  %s1801_s3 = inlined_call_operand.hbm [shape: f32[2,1,8,128], index: 3, kind: output, shape index: {}]  }
   0x1   :  { %9 = vsyncpa [#allocation7], 0 }
   0x2   :  { %11 = vsyncpa [#allocation7 + $0x1], 0 }
   0x3   :  { %12 = vsyncpa [#allocation8], 0 }
   0x4   :  { %14 = vsyncpa [#allocation8 + $0x1], 0  ;;  %s1193_s12 = smov 0   ;;  %s1195_s13 = smov 0  }
   0x5   :  { %s1197_s14 = smov 0   ;;  %s1199_s15 = smov 0  }
   0x6   :  { %s1201_s16 = smov 0   ;;  %s1203_s17 = smov 0  }
   0x7 LB: > { %s802_s18 = sadd.s32 4294967295, %s1161_s17   ;;  %s803_s19 = sadd.s32 4294967294, %s1161_s17   ;;  %s1161_s17 = sphi %s1203_s17, %s20_s17   ;;  %s1157_s16 = sphi %s1201_s16, %s1821_s16   ;;  %s1153_s15 = sphi %s1199_s15, %s1820_s15   ;;  %s1149_s14 = sphi %s1197_s14, %s1819_s14   ;;  %s1145_s13 = sphi %s1195_s13, %s1818_s13   ;;  %s1141_s12 = sphi %s1193_s12, %s1817_s12  }
   0x8   : > { %s62_s20 = sadd.s32 1, %s1149_s14  ;;  %p69_p0 = scmp.ne.s32.totalorder %s1149_s14, %s1145_s13 }
   0x9   : > { %p70_p1 = scmp.eq.s32.totalorder %s1161_s17, 0  ;;  %p75_p2 = scmp.ne.s32.totalorder %s1145_s13, %s1141_s12 }
   0xa   : > { %p1231_p3 = scmp.eq.s32.totalorder %s802_s18, 0  ;;  %p101_p4 = scmp.eq.s32.totalorder %s802_s18, 1 }
   0xb   : > { %p71_p5 = por %p70_p1, %p69_p0  ;;  %p107_p6 = scmp.eq.s32.totalorder %s803_s19, 1 }
   0xc   : > { %s1806_s21 = scalar_select %p1231_p3, 1, 0 }
   0xd   : > { %p1237_p7 = por %p1231_p3, %p75_p2  ;;  %p1241_p8 = por %p101_p4, %p69_p0 }
   0xe   : > { %p1245_p9 = por %p107_p6, %p75_p2  ;;  %p804_p10 = scmp.ge.s32.totalorder %s1161_s17, 1 }
   0xf   : > { %s1807_s22 = scalar_select %p1237_p7, 1, 0 }
  0x10   : > { %s1808_s23 = scalar_select %p1241_p8, 1, 0 }
  0x11   : > { %s1809_s24 = scalar_select %p1245_p9, 1, 0 }
  0x12   : > { %p114_p11 = scmp.lt.s32.totalorder %s1161_s17, 3  ;;  %p875_p1 = scmp.lt.s32.totalorder %s1161_s17, 2 }
  0x13   : > { %s136_s26 = sand.u32 1, %s1149_s14   ;;  %s32_s28 = sadd.s32 1, %s1157_s16 }
  0x14   : > { %p1252_p13 = pnand %p804_p10, %p114_p11  ;;  %p1260_p0 = pnand %p875_p1, %p71_p5 }
  0x15   : > { %s807_s29 = sshll.u32 %s136_s26, 6  ;;  %p34_p4 = scmp.ge.s32.totalorder %s32_s28, 2 }
  0x16   : > { %p862_p7 = pneg %p1252_p13  ;;  %s954_s5 = scalar_lea.hbm %s1798_s0, 64 }
  0x17   : > { %p955_p6 = scmp.ne.s32.totalorder %s1798_s0, %s954_s5  ;;  %p961_p5 = scmp.lt.u32.totalorder %s954_s5, %s1798_s0 }
  0x18   : > { %p863_p2 = pnand %p862_p7, %p1231_p3 }
  0x1a   : > { %p956_p10 = pneg %p863_p2 }
  0x1c   : > { %p957_p11 = pnand %p956_p10, %p955_p6 }
  0x1e   : > { %p958_p12 = pneg %p957_p11 }
  0x20   : > { %p963_p1 = pnand %p961_p5, %p958_p12 }
  0x22   : > { %966 = shalt.err (!%p963_p1)
}
  0x23   : > { %s1163_s10 = smov [#allocation6]   ;;  %s1823_s28 = smov (%p34_p4, %s32_s28), 0 }
  0x24   : > { %865 = dma.hbm_to_smem (!%p863_p2), %s1798_s0, 64, %s1163_s10, [#allocation9]  }
  0x25   : > { %s846_s19 = sshll.u32 %s1157_s16, 10  ;;  %s57_s30 = ssub.s32 %s1157_s16, %s1823_s28 }
  0x26   : > { %s1287_s6 = scalar_lea.hbm %s1800_s2, %s846_s19  ;;  %p60_p7 = scmp.eq.s32.totalorder %s57_s30, 0 }
  0x27   : > { %s140_s7 = scalar_lea.vmem [#allocation10], %s807_s29  ;;  %s1296_s10 = scalar_lea.sflag [#allocation7], %s136_s26 }
  0x28   : > { %s149_s8 = sshll.u32 %s140_s7, 4  ;;  %s967_s11 = scalar_lea.hbm %s1287_s6, 1024  ;;  %s1289_s8 = int_to_ptr.vmem [resolvable:$true] %s149_s8 }
  0x29   : > { %s1294_s9 = scalar_select %p60_p7, %s1149_s14, %s62_s20  }
  0x2a   : > { %p968_p12 = scmp.ne.s32.totalorder %s1287_s6, %s967_s11  ;;  %p969_p2 = pneg %p1260_p0 }
  0x2b   : > { %s972_s29 = scalar_lea.hbm %s1800_s2, 2048  ;;  %p973_p10 = scmp.lt.u32.totalorder %s1287_s6, %s1800_s2 }
  0x2c   : > { %p970_p4 = pnand %p969_p2, %p968_p12  ;;  %p974_p11 = scmp.lt.u32.totalorder %s972_s29, %s967_s11 }
  0x2d   : > { %p976_p1 = scmp.lt.u32.totalorder %s967_s11, %s1287_s6 }
  0x2e   : > { %p971_p6 = pneg %p970_p4  ;;  %p975_p5 = por %p974_p11, %p973_p10 }
  0x30   : > { %p977_p7 = por %p976_p1, %p975_p5 }
  0x32   : > { %p978_p9 = pnand %p977_p7, %p971_p6 }
  0x34   : > { %981 = shalt.err (!%p978_p9)
}
  0x35   : > { %s982_s20 = scalar_lea.vmem %s1289_s8, 1024  ;;  %s1164_s26 = smov [#allocation10]  }
  0x36   : > { %p983_p12 = scmp.ne.s32.totalorder %s1289_s8, %s982_s20  ;;  %s987_s5 = sshll.u32 %s1164_s26, 4  ;;  %s988_s5 = int_to_ptr.vmem [resolvable:$false] %s987_s5 }
  0x37   : > { %s989_s7 = scalar_lea.vmem %s988_s5, 2048  ;;  %p990_p3 = scmp.lt.s32.totalorder %s1289_s8, %s988_s5 }
  0x38   : > { %p985_p4 = pnand %p983_p12, %p969_p2  ;;  %p991_p10 = scmp.lt.s32.totalorder %s989_s7, %s982_s20 }
  0x3a   : > { %p986_p8 = pneg %p985_p4  ;;  %p992_p11 = por %p991_p10, %p990_p3 }
  0x3c   : > { %p993_p5 = pnand %p992_p11, %p986_p8 }
  0x3e   : > { %996 = shalt.err (!%p993_p5)
}
  0x3f   : > { %s1165_s11 = smov 128   ;;  %s1166_s18 = smov 8  }
  0x40   : > { %869 = dma.hbm_to_vmem [thread:$0]  (!%p1260_p0), %s1287_s6, 1024, %s1289_s8, %s1296_s10, %s1165_s11, %s1165_s11, %s1166_s18  }
  0x41   : > { %161 = sbr.rel (%p1252_p13) target bundleno = 573 (0x23d), region = 28  ;;  %p1812_p9 = scmp.ne.s32.totalorder (!%p1252_p13), %s1806_s21, 0 }
  0x48   : > { %1122 = dma.done.wait (%p1812_p9), [#allocation9], 64  }
  0x49   : > { %1124 = vsyncadd (%p1812_p9), [#allocation9], 4294967232  ;;  %s1331_s19 = sand.u32 1, %s1145_s13   ;;  %p1813_p3 = scmp.ne.s32.totalorder %s1807_s22, 0 }
  0x4a   : > { %s812_s29 = sshll.u32 %s1331_s19, 6  ;;  %s168_s30 = scalar_lea.sflag [#allocation7], %s1331_s19 }
  0x4b   : > { %s1335_s4 = scalar_lea.vmem [#allocation10], %s812_s29 }
  0x4c   : > { %1126 = dma.done.wait (%p1813_p3), %s168_s30, 1024  }
  0x4d   : > { %1128 = vsyncadd (%p1813_p3), %s168_s30, 4294966272 }
  0x4e   : > { %176 = sfence }
  0x4f   : > { %s813_s21 = sshll.u32 %s1331_s19, 3  ;;  %s847_s25 = sshll.u32 %s1153_s15, 8  ;;  %v1344_v0 = vld [vmem:[%s1335_s4] sm:$0xff]  ;;  %v1347_v1 = vld [vmem:[%s1335_s4 + $0x8] sm:$0xff]  ;;  %v1350_v2 = vld [vmem:[%s1335_s4 + $0x10] sm:$0xff] }
  0x50   : > { %s1357_s6 = scalar_lea.hbm %s1799_s1, %s847_s25  ;;  %v1360_v3 = vld [vmem:[%s1335_s4 + $0x18] sm:$0xff]  ;;  %v251_v4 = vmax.f32 %v1344_v0, %v1350_v2  ;;  %v1365_v5 = vld [vmem:[%s1335_s4 + $0x20] sm:$0xff]  ;;  %v1368_v6 = vld [vmem:[%s1335_s4 + $0x28] sm:$0xff]  ;;  %s1167_s8 = smov [#allocation2]  }
  0x51   : > { %v252_v7 = vmax.f32 %v1347_v1, %v1360_v3  ;;  %v1373_v8 = vld [vmem:[%s1335_s4 + $0x30] sm:$0xff]  ;;  %s212_s10 = sshll.u32 %s1167_s8, 4  ;;  %s1168_s20 = smov [#allocation3]   ;;  %v1377_v10 = vld [vmem:[%s1335_s4 + $0x38] sm:$0xff]  ;;  %s213_s10 = int_to_ptr.vmem [resolvable:$true] %s212_s10 }
  0x52   : > { %s227_s26 = sshll.u32 %s1168_s20, 4  ;;  %v256_v9 = vmax.f32 %v251_v4, %v1365_v5  ;;  %s997_s5 = scalar_lea.hbm %s1357_s6, 256  ;;  %s1379_s26 = int_to_ptr.vmem [resolvable:$true] %s227_s26 }
  0x53   : > { %v257_v11 = vmax.f32 %v252_v7, %v1368_v6  ;;  %p998_p8 = scmp.ne.s32.totalorder %s1357_s6, %s997_s5  ;;  %s1387_s18 = scalar_lea.hbm %s1799_s1, 512 }
  0x54   : > { %p1000_p13 = scmp.lt.u32.totalorder %s1357_s6, %s1799_s1  ;;  %p1001_p0 = scmp.lt.u32.totalorder %s1387_s18, %s997_s5 }
  0x55   : > { %p1003_p6 = scmp.lt.u32.totalorder %s997_s5, %s1357_s6 }
  0x56   : > { %p1002_p2 = por %p1001_p0, %p1000_p13 }
  0x58   : > { %p1004_p1 = por %p1003_p6, %p1002_p2 }
  0x5a   : > { %p1005_p7 = pnand %p1004_p1, %p998_p8 }
  0x5c   : > { %1008 = shalt.err (!%p1005_p7)  }
  0x5d   : > { %s1009_s8 = scalar_lea.vmem %s213_s10, 256  ;;  %p1014_p4 = scmp.lt.s32.totalorder %s213_s10, %s213_s10 }
  0x5e   : > { %p1010_p12 = scmp.ne.s32.totalorder %s213_s10, %s1009_s8  ;;  %p1015_p10 = scmp.lt.s32.totalorder %s1009_s8, %s1009_s8 }
  0x60   : > { %p1016_p11 = por %p1015_p10, %p1014_p4 }
  0x62   : > { %p1017_p5 = pnand %p1016_p11, %p1010_p12 }
  0x64   : > { %1020 = shalt.err (!%p1017_p5)  }
  0x65   : > { %215 = dma.hbm_to_vmem [thread:$0]  %s1357_s6, 256, %s213_s10, [#allocation5]  ;;  %v1402_v12 = vmax.f32 %v256_v9, %v1373_v8 }
  0x66   : > { %s1021_s20 = scalar_lea.hbm %s1357_s6, 16 }
  0x67   : > { %p1022_p9 = scmp.ne.s32.totalorder %s1357_s6, %s1021_s20  ;;  %p1025_p3 = scmp.lt.u32.totalorder %s1387_s18, %s1021_s20 }
  0x68   : > { %p1027_p0 = scmp.lt.u32.totalorder %s1021_s20, %s1357_s6 }
  0x69   : > { %p1026_p8 = por %p1025_p3, %p1000_p13 }
  0x6b   : > { %p1028_p2 = por %p1027_p0, %p1026_p8 }
  0x6d   : > { %p1029_p6 = pnand %p1028_p2, %p1022_p9 }
  0x6f   : > { %1032 = shalt.err (!%p1029_p6)  }
  0x70   : > { %s1033_s11 = scalar_lea.vmem %s1379_s26, 16  ;;  %p1038_p7 = scmp.lt.s32.totalorder %s1379_s26, %s1379_s26 }
  0x71   : > { %p1034_p1 = scmp.ne.s32.totalorder %s1379_s26, %s1033_s11  ;;  %p1039_p12 = scmp.lt.s32.totalorder %s1033_s11, %s1033_s11 }
  0x73   : > { %p1040_p4 = por %p1039_p12, %p1038_p7 }
  0x75   : > { %p1041_p10 = pnand %p1040_p4, %p1034_p1 }
  0x77   : > { %1044 = shalt.err (!%p1041_p10)  }
  0x78   : > { %230 = dma.hbm_to_vmem [thread:$0]  %s1357_s6, 16, %s1379_s26, [#allocation5 + $0x1]  ;;  %v1420_v13 = vmax.f32 %v257_v11, %v1377_v10  ;;  %v263_v14 = vsub.f32 %v1344_v0, %v1402_v12  ;;  %v269_v15 = vsub.f32 %v1350_v2, %v1402_v12  ;;  %v277_v16 = vsub.f32 %v1365_v5, %v1402_v12 }
  0x79   : > { %s850_s10 = sadd.s32 240, %s847_s25  ;;  %s1169_s6 = smov [#allocation4]   ;;  %v285_v22 = vsub.f32 %v1373_v8, %v1402_v12 }
  0x7a   : > { %s233_s22 = scalar_lea.hbm %s1799_s1, %s850_s10  ;;  %s242_s26 = sshll.u32 %s1169_s6, 4  ;;  %v264_v17 = vsub.f32 %v1347_v1, %v1420_v13  ;;  %v270_v18 = vsub.f32 %v1360_v3, %v1420_v13  ;;  %v278_v19 = vsub.f32 %v1368_v6, %v1420_v13  ;;  %v265_v20 = vmul.f32 1.442695, %v263_v14  ;;  %s243_s26 = int_to_ptr.vmem [resolvable:$true] %s242_s26 }
  0x7b   : > { %v271_v21 = vmul.f32 1.442695, %v269_v15  ;;  %s1045_s25 = scalar_lea.hbm %s233_s22, 16  ;;  %p1048_p11 = scmp.lt.u32.totalorder %s233_s22, %s1799_s1 }
  0x7c   : > { %p1046_p13 = scmp.ne.s32.totalorder %s233_s22, %s1045_s25  ;;  %p1049_p5 = scmp.lt.u32.totalorder %s1387_s18, %s1045_s25 }
  0x7d   : > { %p1051_p3 = scmp.lt.u32.totalorder %s1045_s25, %s233_s22 }
  0x7e   : > { %p1050_p9 = por %p1049_p5, %p1048_p11 }
  0x80   : > { %p1052_p8 = por %p1051_p3, %p1050_p9 }
  0x82   : > { %p1053_p0 = pnand %p1052_p8, %p1046_p13 }
  0x84   : > { %1056 = shalt.err (!%p1053_p0)  }
  0x85   : > { %s1057_s20 = scalar_lea.vmem %s243_s26, 16  ;;  %p1062_p6 = scmp.lt.s32.totalorder %s243_s26, %s243_s26 }
  0x86   : > { %p1058_p2 = scmp.ne.s32.totalorder %s243_s26, %s1057_s20  ;;  %p1063_p1 = scmp.lt.s32.totalorder %s1057_s20, %s1057_s20 }
  0x88   : > { %p1064_p7 = por %p1063_p1, %p1062_p6 }
  0x8a   : > { %p1065_p12 = pnand %p1064_p7, %p1058_p2 }
  0x8c   : > { %1068 = shalt.err (!%p1065_p12)  }
  0x8d   : > { %245 = dma.hbm_to_vmem [thread:$0]  %s233_s22, 16, %s243_s26, [#allocation5 + $0x2]  ;;  %v267_v23 = vmul.f32 1.442695, %v264_v17  ;;  %v273_v24 = vmul.f32 1.442695, %v270_v18  ;;  %v286_v25 = vsub.f32 %v1377_v10, %v1420_v13  ;;  %934 = vpow2.f32 %v265_v20 }
  0x8e   : > { %v279_v26 = vmul.f32 1.442695, %v277_v16  ;;  %v281_v27 = vmul.f32 1.442695, %v278_v19  ;;  %v287_v28 = vmul.f32 1.442695, %v285_v22 }
  0x8f   : > { %936 = vpow2.f32 %v267_v23  ;;  %v289_v29 = vmul.f32 1.442695, %v286_v25  ;;  %s1455_s18 = scalar_lea.vmem [#allocation11], %s813_s21 }
  0x90   : > { %938 = vpow2.f32 %v271_v21 }
  0x91   : > { %940 = vpow2.f32 %v273_v24 }
  0x92   : > { %942 = vpow2.f32 %v279_v26 }
  0x93   : > { %944 = vpow2.f32 %v281_v27 }
  0x94   : > { %946 = vpow2.f32 %v287_v28 }
  0x95   : > { %948 = vpow2.f32 %v289_v29 }
  0x97   : > { %v935_v30 = vpop.eup %934 }
  0x99   : > { %v937_v31 = vpop.eup %936 }
  0x9a   : > { %v939_v32 = vpop.eup %938 }
  0x9b   : > { %v941_v33 = vpop.eup %940  ;;  %v275_v34 = vadd.f32 %v939_v32, %v935_v30 }
  0x9c   : > { %v943_v35 = vpop.eup %942  ;;  %v276_v36 = vadd.f32 %v941_v33, %v937_v31 }
  0x9d   : > { %v945_v37 = vpop.eup %944  ;;  %v283_v38 = vadd.f32 %v943_v35, %v275_v34 }
  0x9e   : > { %v947_v39 = vpop.eup %946  ;;  %v284_v40 = vadd.f32 %v945_v37, %v276_v36 }
  0x9f   : > { %v949_v41 = vpop.eup %948  ;;  %v291_v42 = vadd.f32 %v947_v39, %v283_v38 }
  0xa0   : > { %v292_v43 = vadd.f32 %v949_v41, %v284_v40 }
  0xa1   : > { %950 = vlog2.f32 %v291_v42 }
  0xa2   : > { %952 = vlog2.f32 %v292_v43 }
  0xab   : > { %v951_v44 = vpop.eup %950 }
  0xac   : > { %v953_v45 = vpop.eup %952  ;;  %v294_v46 = vmul.f32 0.6931472, %v951_v44 }
  0xad   : > { %v296_v47 = vmul.f32 0.6931472, %v953_v45 }
  0xae   : > { %v1448_v48 = vadd.f32 %v294_v46, %v1402_v12 }
  0xaf   : > { %v1451_v49 = vadd.f32 %v296_v47, %v1420_v13 }
  0xb0   : > { %1129 = dma.done.wait [#allocation5], 256 }
  0xb1   : > { %1130 = vsyncadd [#allocation5], 4294967040 }
  0xb2   : > { %1131 = dma.done.wait [#allocation5 + $0x1], 16 }
  0xb3   : > { %1132 = vsyncadd [#allocation5 + $0x1], 4294967280 }
  0xb4   : > { %1133 = dma.done.wait [#allocation5 + $0x2], 16 }
  0xb5   : > { %1134 = vsyncadd [#allocation5 + $0x2], 4294967280  ;;  %v1457_v50 = vld [vmem:[#allocation2 + $0x8] sm:$0xff]  ;;  %v1459_v51 = vld [vmem:[#allocation2] sm:$0xff]  ;;  %vm311_vm0 = vcmask 1040384   ;;  %s1170_s5 = smov 1  }
  0xb6   : > { %v309_v52 = vld [vmem:[#allocation3] sm:$0x1]  ;;  %436 = vrot.lane.b32.xlu1 %v1457_v50, %s1170_s5  ;;  %v312_v53 = vrot.slane %v1459_v51, 7  ;;  %v313_v54 = vrot.slane %v1457_v50, 7  ;;  %s1171_s21 = smov 127   ;;  %v318_v57 = vrot.slane %v1457_v50, 1 }
  0xb7   : > { %v824_v58 = vld [vmem:[#allocation4] ss:$0 sm:$0xff]  ;;  %vm316_vm1 = vcmask 1046528   ;;  %v317_v59 = vrot.slane %v1459_v51, 1  ;;  %v1486_v62 = vld [vmem:[%s1335_s4] sm:$0xff]  ;;  %v1490_v63 = vld [vmem:[%s1335_s4 + $0x10] sm:$0xff] }
  0xb8   : > { %v1464_v55 = vsel %vm311_vm0, %v309_v52, %v312_v53  ;;  %v1468_v56 = vsel %vm311_vm0, %v312_v53, %v313_v54  ;;  %v1476_v60 = vsel %vm316_vm1, %v318_v57, %v824_v58  ;;  %vm478_vm6 = vcmp.eq.s32.totalorder %v1457_v50, 0  ;;  %v1500_v0 = vld [vmem:[%s1335_s4 + $0x8] sm:$0xff]  ;;  %v1503_v1 = vld [vmem:[%s1335_s4 + $0x18] sm:$0xff]  ;;  %v1512_v6 = vld [vmem:[%s1335_s4 + $0x20] sm:$0xff]  ;;  %s1525_s7 = sld [smem:[#allocation6 + $0x80]]  ;;  %s1531_s10 = sld [smem:[#allocation6 + $0x1]] }
  0xb9   : > { %325 = vrot.lane.b32.xlu0 %v1464_v55, %s1170_s5  ;;  %v1480_v61 = vsel %vm316_vm1, %v317_v59, %v318_v57  ;;  %vm378_vm2 = vcmp.eq.s32.totalorder %v1464_v55, 0  ;;  %vm382_vm3 = vcmp.eq.s32.totalorder %v1464_v55, 1  ;;  %vm379_vm4 = vcmp.eq.s32.totalorder %v1468_v56, 0  ;;  %v1523_v12 = vld [vmem:[%s1335_s4 + $0x28] sm:$0xff]  ;;  %s1529_s11 = sld [smem:[#allocation6]]  ;;  %s1537_s29 = sld [smem:[#allocation6 + $0x81]] }
  0xba   : > { %332 = vrot.lane.b32.xlu1 %v1464_v55, %s1171_s21  ;;  %vm383_vm5 = vcmp.eq.s32.totalorder %v1468_v56, 1  ;;  %vm482_vm7 = vcmp.eq.s32.totalorder %v1457_v50, 1  ;;  %vm477_vm8 = vcmp.eq.s32.totalorder %v1459_v51, 0  ;;  %vm481_vm9 = vcmp.eq.s32.totalorder %v1459_v51, 1  ;;  %v1546_v20 = vld [vmem:[%s1335_s4 + $0x30] sm:$0xff]  ;;  %v1555_v23 = vld [vmem:[%s1335_s4 + $0x38] sm:$0xff] }
  0xbb   : > { %v380_v2 = vsel %vm378_vm2, %v1486_v62, 0.0  ;;  %vm388_vm10 = vcmp.eq.s32.totalorder %v1464_v55, 2  ;;  %v384_v3 = vsel %vm382_vm3, %v1490_v63, 0.0  ;;  %v381_v4 = vsel %vm379_vm4, %v1500_v0, 0.0  ;;  %s1560_s30 = sld [smem:[#allocation6 + $0x2]]  ;;  %s1574_s22 = sld [smem:[#allocation6 + $0x100]] }
  0xbc   : > { %v385_v5 = vsel %vm383_vm5, %v1503_v1, 0.0  ;;  %vm389_vm11 = vcmp.eq.s32.totalorder %v1468_v56, 2  ;;  %v480_v7 = vsel %vm478_vm6, %v1500_v0, 0.0  ;;  %v484_v8 = vsel %vm482_vm7, %v1503_v1, 0.0  ;;  %s1569_s4 = sld [smem:[#allocation6 + $0x82]]  ;;  %s1584_s6 = sld [smem:[#allocation6 + $0x101]] }
  0xbd   : > { %327 = vrot.lane.b32.xlu0 %v1468_v56, %s1170_s5  ;;  %v479_v9 = vsel %vm477_vm8, %v1486_v62, 0.0  ;;  %v483_v10 = vsel %vm481_vm9, %v1490_v63, 0.0  ;;  %v390_v11 = vsel %vm388_vm10, %v1512_v6, 0.0  ;;  %vm394_vm12 = vcmp.eq.s32.totalorder %v1464_v55, 3  ;;  %s1667_s8 = sld [smem:[#allocation6 + $0x102]]  ;;  %p1814_p10 = scmp.ne.s32.totalorder %s1808_s23, 0 }
  0xbe   : > { %334 = vrot.lane.b32.xlu1 %v1468_v56, %s1171_s21  ;;  %vm488_vm13 = vcmp.eq.s32.totalorder %v1457_v50, 2  ;;  %vm487_vm14 = vcmp.eq.s32.totalorder %v1459_v51, 2  ;;  %v386_v13 = vadd.f32 %v384_v3, %v380_v2  ;;  %v387_v14 = vadd.f32 %v385_v5, %v381_v4 }
  0xbf   : > { %vm577_vm15 = vcmp.eq.s32.totalorder %v1476_v60, 0  ;;  %vm581_vm0 = vcmp.eq.s32.totalorder %v1476_v60, 1  ;;  %v391_v15 = vsel %vm389_vm11, %v1523_v12, 0.0  ;;  %vm395_vm1 = vcmp.eq.s32.totalorder %v1468_v56, 3  ;;  %s377_s26 = sadd.f32 %s1531_s10, %s1529_s11 }
  0xc0   : > { %v486_v16 = vadd.f32 %v484_v8, %v480_v7  ;;  %v485_v17 = vadd.f32 %v483_v10, %v479_v9  ;;  %v490_v18 = vsel %vm488_vm13, %v1523_v12, 0.0  ;;  %vm494_vm2 = vcmp.eq.s32.totalorder %v1457_v50, 3 }
  0xc1   : > { %434 = vrot.lane.b32.xlu0 %v1459_v51, %s1170_s5  ;;  %v489_v19 = vsel %vm487_vm14, %v1512_v6, 0.0  ;;  %vm493_vm3 = vcmp.eq.s32.totalorder %v1459_v51, 3  ;;  %vm576_vm4 = vcmp.eq.s32.totalorder %v1480_v61, 0  ;;  %v579_v21 = vsel %vm577_vm15, %v1500_v0, 0.0  ;;  %s1651_s25 = sadd.f32 %s1560_s30, %s377_s26  ;;  %s661_s26 = scalar_lea.sflag [#allocation8], %s1331_s19 }
  0xc2   : > { %442 = vrot.lane.b32.xlu1 %v1457_v50, %s1171_s21  ;;  %vm580_vm5 = vcmp.eq.s32.totalorder %v1480_v61, 1  ;;  %v583_v22 = vsel %vm581_vm0, %v1503_v1, 0.0  ;;  %v392_v24 = vadd.f32 %v390_v11, %v386_v13  ;;  %v396_v25 = vsel %vm394_vm12, %v1546_v20, 0.0 }
  0xc3   : > { %v393_v26 = vadd.f32 %v391_v15, %v387_v14  ;;  %vm587_vm6 = vcmp.eq.s32.totalorder %v1476_v60, 2  ;;  %v397_v27 = vsel %vm395_vm1, %v1555_v23, 0.0  ;;  %v492_v28 = vadd.f32 %v490_v18, %v486_v16  ;;  %s447_s27 = sadd.f32 %s1525_s7, %s1651_s25 }
  0xc4   : > { %v496_v29 = vsel %vm494_vm2, %v1555_v23, 0.0  ;;  %v491_v30 = vadd.f32 %v489_v19, %v485_v17  ;;  %v495_v31 = vsel %vm493_vm3, %v1546_v20, 0.0  ;;  %v578_v32 = vsel %vm576_vm4, %v1486_v62, 0.0 }
  0xc5   : > { %440 = vrot.lane.b32.xlu0 %v1459_v51, %s1171_s21  ;;  %v582_v33 = vsel %vm580_vm5, %v1490_v63, 0.0  ;;  %v585_v34 = vadd.f32 %v583_v22, %v579_v21  ;;  %vm586_vm7 = vcmp.eq.s32.totalorder %v1480_v61, 2  ;;  %v589_v35 = vsel %vm587_vm6, %v1523_v12, 0.0  ;;  %s1678_s20 = sadd.f32 %s1537_s29, %s447_s27 }
  0xc6   : > { %535 = vrot.lane.b32.xlu1 %v1476_v60, %s1170_s5  ;;  %v398_v36 = vadd.f32 %v396_v25, %v392_v24  ;;  %v399_v37 = vadd.f32 %v397_v27, %v393_v26  ;;  %vm593_vm8 = vcmp.eq.s32.totalorder %v1476_v60, 3  ;;  %v400_v38 = vstv %s1531_s10  ;;  %s840_s10 = sshll.u32 %s1153_s15, 7  ;;  %s1172_s15 = smov [#allocation11]  }
  0xc7   : > { %v498_v39 = vadd.f32 %v496_v29, %v492_v28  ;;  %v497_v40 = vadd.f32 %v495_v31, %v491_v30  ;;  %v584_v41 = vadd.f32 %v582_v33, %v578_v32  ;;  %vm329_vm9 = vcmask 7168   ;;  %s1073_s27 = sshll.u32 %s1172_s15, 4  ;;  %s1074_s27 = int_to_ptr.vmem [resolvable:$false] %s1073_s27 }
  0xc8   : > { %v499_v42 = vstv %s1537_s29  ;;  %v588_v43 = vsel %vm586_vm7, %v1512_v6, 0.0  ;;  %v591_v44 = vadd.f32 %v589_v35, %v585_v34  ;;  %v470_v45 = vstv %s1525_s7  ;;  %s675_s29 = sshll.u32 %s1455_s18, 4  ;;  %s1750_s29 = int_to_ptr.vmem [resolvable:$true] %s675_s29 }
  0xc9   : > { %533 = vrot.lane.b32.xlu0 %v1480_v61, %s1170_s5  ;;  %vm336_vm10 = vcmask 121856   ;;  %vm592_vm11 = vcmp.eq.s32.totalorder %v1480_v61, 3  ;;  %v595_v46 = vsel %vm593_vm8, %v1555_v23, 0.0  ;;  %v371_v47 = vstv %s1529_s11  ;;  %s505_s5 = sadd.f32 %s1569_s4, %s1678_s20  ;;  %s1069_s25 = scalar_lea.vmem %s1750_s29, 128 }
  0xca   : > { %541 = vrot.lane.b32.xlu1 %v1476_v60, %s1171_s21  ;;  %v1594_v52 = vmul.f32 %v400_v38, %v398_v36  ;;  %v429_v53 = vstv %s1560_s30  ;;  %v1597_v54 = vmul.f32 %v400_v38, %v399_v37  ;;  %v1599_v58 = vmul.f32 %v499_v42, %v498_v39  ;;  %p1070_p4 = scmp.ne.s32.totalorder %s1750_s29, %s1069_s25  ;;  %p1076_p5 = scmp.lt.s32.totalorder %s1750_s29, %s1074_s27 }
  0xcb   : > { %v528_v59 = vstv %s1569_s4  ;;  %v1602_v2 = vmul.f32 %v499_v42, %v497_v40  ;;  %v590_v3 = vadd.f32 %v588_v43, %v584_v41  ;;  %v569_v5 = vstv %s1574_s22 }
  0xcc   : > { %v594_v7 = vsel %vm592_vm11, %v1546_v20, 0.0  ;;  %v597_v8 = vadd.f32 %v595_v46, %v591_v44  ;;  %v598_v14 = vstv %s1584_s6  ;;  %p1071_p13 = pnand %p1070_p4, %p1814_p10 }
  0xcd   : > { %539 = vrot.lane.b32.xlu0 %v1480_v61, %s1171_s21  ;;  %v1615_v19 = vadd.f32 %v594_v7, %v590_v3  ;;  %s1703_s21 = sadd.f32 %s1574_s22, %s505_s5 }
  0xce   : > { %v1621_v25 = vmul.f32 %v598_v14, %v597_v8  ;;  %p1072_p11 = pneg %p1071_p13 }
  0xcf   : > { %s575_s7 = sadd.f32 %s1584_s6, %s1703_s21  ;;  %s1748_s6 = scalar_lea.hbm %s1801_s3, %s840_s10 }
  0xd1   : > { %s604_s11 = sadd.f32 %s1667_s8, %s575_s7 }
 0x128   : > { %v437_v57 = vpop.permute.xlu1 %436 }
 0x129   : > { %v439_v4 = vsel %vm329_vm9, %v1457_v50, %v437_v57 }
 0x12a   : > { %vm449_vm12 = vcmp.eq.s32.totalorder %v439_v4, 0  ;;  %vm453_vm13 = vcmp.eq.s32.totalorder %v439_v4, 1  ;;  %vm459_vm14 = vcmp.eq.s32.totalorder %v439_v4, 2  ;;  %vm465_vm15 = vcmp.eq.s32.totalorder %v439_v4, 3 }
 0x12b   : > { %v451_v9 = vsel %vm449_vm12, %v1500_v0, 0.0  ;;  %v455_v10 = vsel %vm453_vm13, %v1503_v1, 0.0  ;;  %v461_v11 = vsel %vm459_vm14, %v1523_v12, 0.0  ;;  %v326_v13 = vpop.permute.xlu0 %325  ;;  %v467_v16 = vsel %vm465_vm15, %v1555_v23, 0.0 }
 0x12c   : > { %v457_v15 = vadd.f32 %v455_v10, %v451_v9  ;;  %v330_v17 = vsel %vm329_vm9, %v1464_v55, %v326_v13  ;;  %v333_v18 = vpop.permute.xlu1 %332 }
 0x12d   : > { %vm341_vm0 = vcmp.eq.s32.totalorder %v330_v17, 0  ;;  %vm347_vm1 = vcmp.eq.s32.totalorder %v330_v17, 1  ;;  %vm355_vm2 = vcmp.eq.s32.totalorder %v330_v17, 2  ;;  %vm363_vm3 = vcmp.eq.s32.totalorder %v330_v17, 3 }
 0x12e   : > { %v463_v21 = vadd.f32 %v461_v11, %v457_v15  ;;  %v345_v22 = vsel %vm341_vm0, %v1486_v62, 0.0  ;;  %v351_v24 = vsel %vm347_vm1, %v1490_v63, 0.0  ;;  %v359_v27 = vsel %vm355_vm2, %v1512_v6, 0.0 }
 0x12f   : > { %v353_v26 = vadd.f32 %v351_v24, %v345_v22  ;;  %v367_v28 = vsel %vm363_vm3, %v1546_v20, 0.0  ;;  %v337_v29 = vsel %vm336_vm10, %v333_v18, %v1464_v55  ;;  %v328_v30 = vpop.permute.xlu0 %327 }
 0x130   : > { %v469_v31 = vadd.f32 %v467_v16, %v463_v21  ;;  %vm407_vm4 = vcmp.eq.s32.totalorder %v337_v29, 0  ;;  %vm411_vm5 = vcmp.eq.s32.totalorder %v337_v29, 1  ;;  %vm417_vm6 = vcmp.eq.s32.totalorder %v337_v29, 2  ;;  %v335_v40 = vpop.permute.xlu1 %334 }
 0x131   : > { %v361_v32 = vadd.f32 %v359_v27, %v353_v26  ;;  %v409_v33 = vsel %vm407_vm4, %v1486_v62, 0.0  ;;  %v413_v34 = vsel %vm411_vm5, %v1490_v63, 0.0  ;;  %v419_v35 = vsel %vm417_vm6, %v1512_v6, 0.0 }
 0x132   : > { %v1632_v36 = vmul.f32 %v470_v45, %v469_v31  ;;  %v415_v37 = vadd.f32 %v413_v34, %v409_v33  ;;  %vm423_vm7 = vcmp.eq.s32.totalorder %v337_v29, 3  ;;  %v331_v55 = vsel %vm329_vm9, %v1468_v56, %v328_v30 }
 0x133   : > { %v369_v38 = vadd.f32 %v367_v28, %v361_v32  ;;  %v425_v39 = vsel %vm423_vm7, %v1546_v20, 0.0  ;;  %vm342_vm8 = vcmp.eq.s32.totalorder %v331_v55, 0  ;;  %vm348_vm11 = vcmp.eq.s32.totalorder %v331_v55, 1  ;;  %v435_v41 = vpop.permute.xlu0 %434 }
 0x134   : > { %v421_v42 = vadd.f32 %v419_v35, %v415_v37  ;;  %v346_v43 = vsel %vm342_vm8, %v1500_v0, 0.0  ;;  %v352_v44 = vsel %vm348_vm11, %v1503_v1, 0.0  ;;  %vm356_vm12 = vcmp.eq.s32.totalorder %v331_v55, 2 }
 0x135   : > { %v372_v46 = vmul.f32 %v371_v47, %v369_v38  ;;  %v354_v57 = vadd.f32 %v352_v44, %v346_v43  ;;  %v360_v3 = vsel %vm356_vm12, %v1523_v12, 0.0  ;;  %vm364_vm13 = vcmp.eq.s32.totalorder %v331_v55, 3 }
 0x136   : > { %v427_v4 = vadd.f32 %v425_v39, %v421_v42  ;;  %v368_v7 = vsel %vm364_vm13, %v1555_v23, 0.0  ;;  %v338_v8 = vsel %vm336_vm10, %v335_v40, %v1468_v56  ;;  %v438_v9 = vsel %vm329_vm9, %v1459_v51, %v435_v41 }
 0x137   : > { %v403_v10 = vadd.f32 %v1594_v52, %v372_v46  ;;  %v362_v11 = vadd.f32 %v360_v3, %v354_v57  ;;  %vm408_vm14 = vcmp.eq.s32.totalorder %v338_v8, 0  ;;  %vm412_vm15 = vcmp.eq.s32.totalorder %v338_v8, 1  ;;  %v443_v52 = vpop.permute.xlu1 %442  ;;  %v441_v34 = vpop.permute.xlu0 %440 }
 0x138   : > { %v430_v13 = vmul.f32 %v429_v53, %v427_v4  ;;  %v410_v15 = vsel %vm408_vm14, %v1500_v0, 0.0  ;;  %v414_v16 = vsel %vm412_vm15, %v1503_v1, 0.0  ;;  %vm418_vm0 = vcmp.eq.s32.totalorder %v338_v8, 2 }
 0x139   : > { %v370_v56 = vadd.f32 %v368_v7, %v362_v11  ;;  %v416_v17 = vadd.f32 %v414_v16, %v410_v15  ;;  %v420_v18 = vsel %vm418_vm0, %v1523_v12, 0.0  ;;  %vm424_vm1 = vcmp.eq.s32.totalorder %v338_v8, 3 }
 0x13a   : > { %v432_v21 = vadd.f32 %v430_v13, %v403_v10  ;;  %v426_v22 = vsel %vm424_vm1, %v1555_v23, 0.0  ;;  %vm448_vm2 = vcmp.eq.s32.totalorder %v438_v9, 0  ;;  %vm452_vm3 = vcmp.eq.s32.totalorder %v438_v9, 1 }
 0x13b   : > { %v373_v24 = vmul.f32 %v371_v47, %v370_v56  ;;  %v422_v26 = vadd.f32 %v420_v18, %v416_v17  ;;  %v450_v27 = vsel %vm448_vm2, %v1486_v62, 0.0  ;;  %v454_v28 = vsel %vm452_vm3, %v1490_v63, 0.0  ;;  %v536_v57 = vpop.permute.xlu1 %535 }
 0x13c   : > { %v456_v29 = vadd.f32 %v454_v28, %v450_v27  ;;  %vm458_vm4 = vcmp.eq.s32.totalorder %v438_v9, 2  ;;  %vm464_vm5 = vcmp.eq.s32.totalorder %v438_v9, 3  ;;  %v445_v30 = vsel %vm336_vm10, %v443_v52, %v1457_v50 }
 0x13d   : > { %v404_v31 = vadd.f32 %v1597_v54, %v373_v24  ;;  %v428_v32 = vadd.f32 %v426_v22, %v422_v26  ;;  %v460_v47 = vsel %vm458_vm4, %v1512_v6, 0.0  ;;  %v466_v33 = vsel %vm464_vm5, %v1546_v20, 0.0 }
 0x13e   : > { %v462_v35 = vadd.f32 %v460_v47, %v456_v29  ;;  %vm507_vm6 = vcmp.eq.s32.totalorder %v445_v30, 0  ;;  %vm511_vm7 = vcmp.eq.s32.totalorder %v445_v30, 1  ;;  %vm517_vm8 = vcmp.eq.s32.totalorder %v445_v30, 2 }
 0x13f   : > { %v431_v37 = vmul.f32 %v429_v53, %v428_v32  ;;  %v509_v55 = vsel %vm507_vm6, %v1500_v0, 0.0  ;;  %v513_v50 = vsel %vm511_vm7, %v1503_v1, 0.0  ;;  %v519_v38 = vsel %vm517_vm8, %v1523_v12, 0.0  ;;  %v542_v26 = vpop.permute.xlu1 %541 }
 0x140   : > { %v468_v54 = vadd.f32 %v466_v33, %v462_v35  ;;  %v515_v39 = vadd.f32 %v513_v50, %v509_v55  ;;  %vm523_vm11 = vcmp.eq.s32.totalorder %v445_v30, 3  ;;  %v444_v40 = vsel %vm336_vm10, %v441_v34, %v1459_v51  ;;  %v534_v51 = vpop.permute.xlu0 %533 }
 0x141   : > { %v433_v41 = vadd.f32 %v431_v37, %v404_v31  ;;  %v525_v42 = vsel %vm523_vm11, %v1555_v23, 0.0  ;;  %vm506_vm12 = vcmp.eq.s32.totalorder %v444_v40, 0  ;;  %vm510_vm13 = vcmp.eq.s32.totalorder %v444_v40, 1 }
 0x142   : > { %v471_v53 = vmul.f32 %v470_v45, %v468_v54  ;;  %v521_v43 = vadd.f32 %v519_v38, %v515_v39  ;;  %v508_v44 = vsel %vm506_vm12, %v1486_v62, 0.0  ;;  %v512_v46 = vsel %vm510_vm13, %v1490_v63, 0.0 }
 0x143   : > { %v474_v3 = vadd.f32 %v1632_v36, %v433_v41  ;;  %v514_v4 = vadd.f32 %v512_v46, %v508_v44  ;;  %vm516_vm14 = vcmp.eq.s32.totalorder %v444_v40, 2  ;;  %vm522_vm15 = vcmp.eq.s32.totalorder %v444_v40, 3 }
 0x144   : > { %v473_v7 = vadd.f32 %v471_v53, %v432_v21  ;;  %v527_v8 = vadd.f32 %v525_v42, %v521_v43  ;;  %v518_v9 = vsel %vm516_vm14, %v1512_v6, 0.0  ;;  %v627_v45 = vstv %s1667_s8  ;;  %v540_v27 = vpop.permute.xlu0 %539  ;;  %s1075_s8 = scalar_lea.vmem %s1074_s27, 256 }
 0x145   : > { %v503_v10 = vadd.f32 %v1599_v58, %v474_v3  ;;  %v520_v11 = vadd.f32 %v518_v9, %v514_v4  ;;  %v524_v13 = vsel %vm522_vm15, %v1546_v20, 0.0  ;;  %v538_v15 = vsel %vm329_vm9, %v1476_v60, %v536_v57  ;;  %p1077_p9 = scmp.lt.s32.totalorder %s1075_s8, %s1069_s25 }
 0x146   : > { %v530_v36 = vmul.f32 %v528_v59, %v527_v8  ;;  %vm548_vm0 = vcmp.eq.s32.totalorder %v538_v15, 0  ;;  %vm552_vm1 = vcmp.eq.s32.totalorder %v538_v15, 1  ;;  %v537_v16 = vsel %vm329_vm9, %v1480_v61, %v534_v51 }
 0x147   : > { %v526_v56 = vadd.f32 %v524_v13, %v520_v11  ;;  %v550_v17 = vsel %vm548_vm0, %v1500_v0, 0.0  ;;  %v554_v18 = vsel %vm552_vm1, %v1503_v1, 0.0  ;;  %vm558_vm2 = vcmp.eq.s32.totalorder %v538_v15, 2  ;;  %p1078_p3 = por %p1077_p9, %p1076_p5 }
 0x148   : > { %v502_v58 = vadd.f32 %v1602_v2, %v473_v7  ;;  %v556_v52 = vadd.f32 %v554_v18, %v550_v17  ;;  %v560_v21 = vsel %vm558_vm2, %v1523_v12, 0.0  ;;  %vm564_vm3 = vcmp.eq.s32.totalorder %v538_v15, 3 }
 0x149   : > { %v532_v22 = vadd.f32 %v530_v36, %v503_v10  ;;  %v566_v24 = vsel %vm564_vm3, %v1555_v23, 0.0  ;;  %vm547_vm9 = vcmp.eq.s32.totalorder %v537_v16, 0  ;;  %vm551_vm4 = vcmp.eq.s32.totalorder %v537_v16, 1  ;;  %p1079_p8 = pnand %p1078_p3, %p1072_p11 }
 0x14a   : > { %v562_v28 = vadd.f32 %v560_v21, %v556_v52  ;;  %v549_v29 = vsel %vm547_vm9, %v1486_v62, 0.0  ;;  %v553_v30 = vsel %vm551_vm4, %v1490_v63, 0.0  ;;  %vm557_vm5 = vcmp.eq.s32.totalorder %v537_v16, 2 }
 0x14b   : > { %v529_v2 = vmul.f32 %v528_v59, %v526_v56  ;;  %v555_v31 = vadd.f32 %v553_v30, %v549_v29  ;;  %v559_v32 = vsel %vm557_vm5, %v1512_v6, 0.0  ;;  %vm563_vm6 = vcmp.eq.s32.totalorder %v537_v16, 3 }
 0x14c   : > { %v568_v47 = vadd.f32 %v566_v24, %v562_v28  ;;  %v565_v33 = vsel %vm563_vm6, %v1546_v20, 0.0  ;;  %v544_v34 = vsel %vm336_vm10, %v542_v26, %v1476_v60  ;;  %v543_v35 = vsel %vm336_vm10, %v540_v27, %v1480_v61 }
 0x14d   : > { %v561_v37 = vadd.f32 %v559_v32, %v555_v31  ;;  %vm606_vm7 = vcmp.eq.s32.totalorder %v544_v34, 0  ;;  %vm610_vm8 = vcmp.eq.s32.totalorder %v544_v34, 1  ;;  %vm616_vm11 = vcmp.eq.s32.totalorder %v544_v34, 2 }
 0x14e   : > { %v571_v59 = vmul.f32 %v569_v5, %v568_v47  ;;  %v608_v55 = vsel %vm606_vm7, %v1500_v0, 0.0  ;;  %v612_v50 = vsel %vm610_vm8, %v1503_v1, 0.0  ;;  %v618_v38 = vsel %vm616_vm11, %v1523_v12, 0.0 }
 0x14f   : > { %v567_v54 = vadd.f32 %v565_v33, %v561_v37  ;;  %v614_v39 = vadd.f32 %v612_v50, %v608_v55  ;;  %vm622_vm12 = vcmp.eq.s32.totalorder %v544_v34, 3  ;;  %vm605_vm13 = vcmp.eq.s32.totalorder %v543_v35, 0 }
 0x150   : > { %v624_v60 = vsel %vm622_vm12, %v1555_v23, 0.0  ;;  %v607_v61 = vsel %vm605_vm13, %v1486_v62, 0.0  ;;  %vm609_vm10 = vcmp.eq.s32.totalorder %v543_v35, 1  ;;  %vm615_vm14 = vcmp.eq.s32.totalorder %v543_v35, 2 }
 0x151   : > { %v531_v40 = vadd.f32 %v529_v2, %v502_v58  ;;  %v570_v0 = vmul.f32 %v569_v5, %v567_v54  ;;  %v620_v41 = vadd.f32 %v618_v38, %v614_v39  ;;  %v611_v1 = vsel %vm609_vm10, %v1490_v63, 0.0 }
 0x152   : > { %v613_v12 = vadd.f32 %v611_v1, %v607_v61  ;;  %vm621_vm15 = vcmp.eq.s32.totalorder %v543_v35, 3  ;;  %v573_v42 = vadd.f32 %v571_v59, %v532_v22  ;;  %v599_v53 = vmul.f32 %v598_v14, %v1615_v19 }
 0x153   : > { %v626_v43 = vadd.f32 %v624_v60, %v620_v41  ;;  %v617_v23 = vsel %vm615_vm14, %v1512_v6, 0.0  ;;  %v572_v62 = vadd.f32 %v570_v0, %v531_v40  ;;  %v632_v44 = vstv %s604_s11 }
 0x154   : > { %v619_v46 = vadd.f32 %v617_v23, %v613_v12  ;;  %v602_v57 = vadd.f32 %v1621_v25, %v573_v42  ;;  %v623_v5 = vsel %vm621_vm15, %v1546_v20, 0.0  ;;  %v634_v51 = vmul.f32 %v632_v44, %v1451_v49 }
 0x155   : > { %v629_v3 = vmul.f32 %v627_v45, %v626_v43  ;;  %v601_v4 = vadd.f32 %v599_v53, %v572_v62  ;;  %v633_v14 = vmul.f32 %v632_v44, %v1448_v48  ;;  %vm637_vm0 = vcmask 130048  }
 0x156   : > { %v625_v63 = vadd.f32 %v623_v5, %v619_v46  ;;  %v650_v48 = vlaneseq }
 0x157   : > { %v631_v7 = vadd.f32 %v629_v3, %v602_v57 }
 0x158   : > { %v628_v8 = vmul.f32 %v627_v45, %v625_v63  ;;  %v651_v56 = vshrl.u32 %v650_v48, 7  ;;  %v653_v17 = vand.u32 127, %v650_v48 }
 0x159   : > { %v636_v6 = vsub.f32 %v634_v51, %v631_v7 }
 0x15a   : > { %v630_v19 = vadd.f32 %v628_v8, %v601_v4  ;;  %vm654_vm1 = vcmp.eq.s32.totalorder %v651_v56, 0  ;;  %vm655_vm2 = vcmp.eq.s32.totalorder %v653_v17, 0 }
 0x15b   : > { %v639_v11 = vsel %vm637_vm0, %v636_v6, 0.0  ;;  %vm656_vm3 = vmand %vm654_vm1, %vm655_vm2 }
 0x15c   : > { %v635_v9 = vsub.f32 %v633_v14, %v630_v19 }
 0x15e   : > { %v638_v10 = vsel %vm637_vm0, %v635_v9, 0.0 }
 0x15f   : > { %v640_v25 = vadd.f32 %v639_v11, %v638_v10 }
 0x161   : > { %641 = vadd.xlane.f32.xlu0 %v640_v25 }
 0x1ee   : > { %v642_v20 = vpop.xlane.xlu0 %641 }
 0x1ef   : > { %v643_v13 = vrot.slane %v642_v20, 4 }
 0x1f1   : > { %v644_v15 = vadd.f32 %v643_v13, %v642_v20 }
 0x1f3   : > { %v645_v36 = vrot.slane %v644_v15, 2 }
 0x1f5   : > { %v646_v49 = vadd.f32 %v645_v36, %v644_v15 }
 0x1f7   : > { %v647_v16 = vrot.slane %v646_v49, 1 }
 0x1f9   : > { %v648_v45 = vadd.f32 %v647_v16, %v646_v49 }
 0x1fb   : > { %852 = vpush %v648_v45 }
 0x22c   : > { %s853_s30 = spop %852 }
 0x22d   : > { %v657_v18 = vstv %s853_s30 }
 0x22e   : > { %v658_v58 = vsel %vm656_vm3, %v657_v18, 0.0 }
 0x22f   : > { %659 = vst [vmem:[%s1455_s18] sm:$0xff] %v658_v58 }
 0x230   : > { %1082 = shalt.err (!%p1079_p8)
}
 0x231   : > { %s1083_s19 = scalar_lea.hbm %s1748_s6, 128  ;;  %s1087_s5 = scalar_lea.hbm %s1801_s3, 256 }
 0x232   : > { %p1084_p0 = scmp.ne.s32.totalorder %s1748_s6, %s1083_s19  ;;  %p1088_p1 = scmp.lt.u32.totalorder %s1748_s6, %s1801_s3 }
 0x233   : > { %p1089_p7 = scmp.lt.u32.totalorder %s1087_s5, %s1083_s19  ;;  %p1091_p4 = scmp.lt.u32.totalorder %s1083_s19, %s1748_s6 }
 0x234   : > { %p1085_p2 = pnand %p1084_p0, %p1814_p10 }
 0x235   : > { %p1090_p12 = por %p1089_p7, %p1088_p1 }
 0x236   : > { %p1086_p6 = pneg %p1085_p2 }
 0x237   : > { %p1092_p13 = por %p1091_p4, %p1090_p12 }
 0x239   : > { %p1093_p11 = pnand %p1092_p13, %p1086_p6 }
 0x23b   : > { %1096 = shalt.err (!%p1093_p11)
}
 0x23c   : > { %860 = dma.vmem_to_hbm [thread:$0]  (%p1814_p10), %s1750_s29, 128, %s1748_s6, %s661_s26  }
 0x23d PF: > { %s687_s11 = sand.u32 1, %s1141_s12   ;;  %p1815_p5 = scmp.ne.s32.totalorder %s1809_s24, 0 }
 0x23e   : > { %p1816_p9 = scmp.ge.s32.totalorder %s1161_s17, 2  ;;  %s688_s10 = scalar_lea.sflag [#allocation8], %s687_s11 }
 0x240   : > { %p871_p3 = pnand %p1816_p9, %p1815_p5 }
 0x242   : > { %1136 = dma.done.wait (!%p871_p3), %s688_s10, 128  }
 0x243   : > { %1138 = vsyncadd (!%p871_p3), %s688_s10, 4294967168  ;;  %s20_s17 = sadd.s32 1, %s1161_s17   ;;  %s1817_s12 = smov %s1145_s13 }
 0x244   : > { %p17_p8 = scmp.ge.s32.totalorder %s20_s17, 4   ;;  %s1818_s13 = smov %s1149_s14 }
 0x245   : > { %s1819_s14 = smov %s1294_s9  ;;  %s1820_s15 = smov %s1157_s16 }
 0x246   : > { %s1821_s16 = smov %s1823_s28  ;;  %19 = sbr.rel (!%p17_p8) target bundleno = 7 (0x7), region = 100 }
 0x24d   :  { %693 = vsyncpa [#allocation7], 1 }
 0x24e   :  { %695 = vsyncpa [#allocation7 + $0x1], 1 }
 0x24f   :  { %696 = vsyncpa [#allocation8], 1 }
 0x250   :  { %698 = vsyncpa [#allocation8 + $0x1], 1 }
 0x251   :  { %699 = vsyncpa [#allocation9], 1 }
 0x252   :  { %701 = vsyncpa [#allocation9 + $0x1], 1 }
 0x253   :  { %702 = vsyncmov [#allocation5] }
 0x256   :  { %s703_s23 = vpop.sfrf %702 }
 0x257   :  { %p843_p10 = scmp.ne.s32.totalorder %s703_s23, 0 }
 0x259   :  { %707 = shalt.err (%p843_p10)  }
 0x25a   :  { %709 = vsyncmov [#allocation5 + $0x1] }
 0x25d   :  { %s710_s24 = vpop.sfrf %709 }
 0x25e   :  { %p844_p0 = scmp.ne.s32.totalorder %s710_s24, 0 }
 0x260   :  { %714 = shalt.err (%p844_p0)  }
 0x261   :  { %716 = vsyncmov [#allocation5 + $0x2] }
 0x264   :  { %s717_s9 = vpop.sfrf %716 }
 0x265   :  { %p845_p2 = scmp.ne.s32.totalorder %s717_s9, 0 }
 0x267   :  { %721 = shalt.err (%p845_p2)  }

</bundles_post_ra>
